<compile_context>
chip_gen: v7x
topology: tpu7x:2x2x1
jax: 0.10.0
libtpu: 0.0.40
codegen_flags: <defaults>
</compile_context>

<pallas_src>
import math

import jax
import jax.numpy as jnp
import numpy as np
from jax.experimental import pallas as pl
from jax.experimental.pallas import tpu as pltpu


# ----------------------------------------------------------------------------
# Bilinear-resize matrix (PyTorch F.interpolate, mode='bilinear',
# align_corners=False) expressed as a dense (out, in) matrix (numpy constant).
# ----------------------------------------------------------------------------
def _resize_matrix(in_size: int, out_size: int) -> np.ndarray:
    scale = in_size / out_size
    coords = (np.arange(out_size, dtype=np.float64) + 0.5) * scale - 0.5
    coords = np.maximum(coords, 0.0)     # PyTorch clamps negative src coords to 0
    lo = np.floor(coords)
    lam = (coords - lo).astype(np.float32)
    lo_i = np.clip(lo.astype(np.int64), 0, in_size - 1)
    hi_i = np.clip(lo_i + 1, 0, in_size - 1)
    m = np.zeros((out_size, in_size), np.float32)
    rows = np.arange(out_size)
    np.add.at(m, (rows, lo_i), 1.0 - lam)
    np.add.at(m, (rows, hi_i), lam)
    return m


# ----------------------------------------------------------------------------
# Chip-aware VMEM budgeting for the query-block size.
# ----------------------------------------------------------------------------
_VMEM_LIMIT_CACHE = []
_BUFFERED_CONSTS = {"enabled": True}   # flipped off if pl.Buffered(1) is rejected


def _vmem_limit_bytes() -> int:
    """Scoped VMEM request: half the physical VMEM (64 MiB on v5e/v6e,
    32 MiB on v7x); conservative 32 MiB fallback if the query fails."""
    if not _VMEM_LIMIT_CACHE:
        try:
            cap = int(pltpu.get_tpu_info().vmem_capacity_bytes)
            limit = min(cap // 2, 64 << 20)
        except Exception:
            limit = 32 << 20
        _VMEM_LIMIT_CACHE.append(limit)
    return _VMEM_LIMIT_CACHE[0]


def _legality_step(w: int, W: int) -> int:
    # smallest Qb such that Qb*w and Qb*W are multiples of 128 (needed only
    # when more than one query block is used)
    return math.lcm(128 // math.gcd(128, w), 128 // math.gcd(128, W))


def _step_vmem_bytes(Qb, T, h, w, H, W) -> int:
    """Rough per-grid-step VMEM footprint for query-block size Qb."""
    L = Qb * W
    Lw = Qb * w
    return (2 * T * H * L           # int8 target block, double-buffered
            + 2 * T * h * Lw * 4    # f32 pred block, double-buffered
            + Lw * L * 4            # block-diagonal x-resize (single buffer);
                                    # quadratic in Qb -> caps Qb growth
            + H * h * 4             # y-resize matrix
            + 16 * H * L * 4        # live elementwise temporaries + accumulators
            + 2 * 8 * L * 4)        # output slab


def _choose_qb(Q, T, h, w, H, W, budget) -> int:
    """Largest query block that fits the VMEM budget.  A single block
    (Qb == Q) removes all divisibility / padding / mask handling and is
    preferred whenever it fits."""
    step = _legality_step(w, W)
    if Q <= step:
        return Q                                 # already the smallest legal block
    if _step_vmem_bytes(Q, T, h, w, H, W) <= budget:
        return Q                                 # single block for all queries
    qb = step
    while (qb + step) < Q and _step_vmem_bytes(qb + step, T, h, w, H, W) <= budget:
        qb += step
    return qb


# ----------------------------------------------------------------------------
# Target relayout, hoisted out of the per-level / per-aux-output loops.
# ----------------------------------------------------------------------------
def _prepare_target_layout(target, Qpad: int):
    """[B,T,Q,H,W] {0,1} targets -> query-folded int8 [B,T,H,Qpad*W].
    TODO(synk): int8 shipping assumes hard {0,1} masks; soft targets would truncate."""
    B, T, Q, H, W = target.shape
    t = target
    if Qpad != Q:
        t = jnp.pad(t, [(0, 0), (0, 0), (0, Qpad - Q), (0, 0), (0, 0)])
    t = jnp.transpose(t, (0, 1, 3, 2, 4)).reshape(B, T, H, Qpad * W)
    return t.astype(jnp.int8)


# ----------------------------------------------------------------------------
# Pallas kernel.  Grid = (B, num_query_blocks); both axes "parallel".
# Each grid step processes all T frames of one (batch, query-block) tile and
# writes its own (8, L) partial slab (no cross-step scratch / carry).
# ----------------------------------------------------------------------------
def _make_kernel(alpha: float, use_mask: bool):
    def body(ry_ref, rxb_ref, m_ref, p_ref, tgt_ref, o_ref):
        T, H, L = tgt_ref.shape
        ry = ry_ref[...]                               # (H, h)
        rxb = rxb_ref[...]                             # (Qb*w, L)
        m = m_ref[...] if use_mask else None           # (1, L) query-valid mask

        zeros = jnp.zeros((H, L), jnp.float32)
        acc_focal = zeros
        acc_prob = zeros
        acc_prod = zeros
        acc_tgt = zeros
        acc_temp = zeros
        d_prev = zeros

        # Static unroll over frames (T is small and static): the temporal
        # carry (d_prev) stays in values instead of a VMEM scratch round trip.
        for t in range(T):
            p = p_ref[t]                               # (h, Qb*w) f32 logits
            tgtf = tgt_ref[t].astype(jnp.float32)      # (H, L) from int8 {0,1}

            # bilinear upsample on the MXU: Ry @ P @ blockdiag(Rx^T)
            y = jnp.dot(ry, p, preferred_element_type=jnp.float32)
            x = jnp.dot(y, rxb, preferred_element_type=jnp.float32)

            # shared exp(-|x|) drives both sigmoid and BCE-with-logits;
            # approx vrcp keeps the divide off the exact-EUP path.
            e = jnp.exp(-jnp.abs(x))
            r = pl.reciprocal(1.0 + e, approx=True)
            prob = jnp.where(x >= 0.0, r, 1.0 - r)     # sigmoid(x)

            is_fg = tgtf > 0.5
            ce = jnp.maximum(x, 0.0) - x * tgtf + jnp.log1p(e)
            one_m_pt = jnp.where(is_fg, 1.0 - prob, prob)      # 1 - p_t
            alpha_t = jnp.where(is_fg, alpha, 1.0 - alpha)
            focal = alpha_t * ce * one_m_pt * one_m_pt

            if use_mask:
                focal = focal * m
                prob_eff = prob * m
            else:
                prob_eff = prob

            # full-slab VALU accumulation; sublane reduction deferred to flush.
            acc_focal = acc_focal + focal
            acc_prob = acc_prob + prob_eff
            # padded targets are exactly zero, so prod/tgt need no extra mask
            acc_prod = acc_prod + prob_eff * tgtf
            acc_tgt = acc_tgt + tgtf

            d = prob - tgtf
            if t > 0:
                temporal = jnp.abs(d - d_prev)
                if use_mask:
                    temporal = temporal * m
                acc_temp = acc_temp + temporal
            d_prev = d

        # one sublane reduce per quantity per (b, qb) block
        o_ref[0:1, :] = jnp.sum(acc_focal, axis=0, keepdims=True)
        o_ref[1:2, :] = jnp.sum(acc_prob, axis=0, keepdims=True)
        o_ref[2:3, :] = jnp.sum(acc_prod, axis=0, keepdims=True)
        o_ref[3:4, :] = jnp.sum(acc_tgt, axis=0, keepdims=True)
        o_ref[4:5, :] = jnp.sum(acc_temp, axis=0, keepdims=True)
        o_ref[5:8, :] = jnp.zeros((3, L), jnp.float32)

    if use_mask:
        def kernel(ry_ref, rxb_ref, m_ref, p_ref, tgt_ref, o_ref):
            body(ry_ref, rxb_ref, m_ref, p_ref, tgt_ref, o_ref)
        return kernel

    def kernel(ry_ref, rxb_ref, p_ref, tgt_ref, o_ref):
        body(ry_ref, rxb_ref, None, p_ref, tgt_ref, o_ref)
    return kernel


def mask_losses_pallas(pred_lo, target, focal_alpha=0.25, *,
                       tgt_cache=None, vmem_budget_bytes=None):
    """pred_lo: [B,T,Q,h,w] logits, target: [B,T,Q,H,W] in {0,1}.
    Returns (focal_loss, dice_loss, temporal_loss) scalars."""
    B, T, Q, h, w = pred_lo.shape
    H, W = target.shape[-2:]

    limit = _vmem_limit_bytes()
    budget = vmem_budget_bytes if vmem_budget_bytes is not None else (limit * 3) // 4
    Qb = _choose_qb(Q, T, h, w, H, W, budget)
    Qpad = -(-Q // Qb) * Qb
    QB = Qpad // Qb
    needs_mask = Qpad != Q

    pred_lo = pred_lo.astype(jnp.float32)
    if needs_mask:
        pred_lo = jnp.pad(pred_lo, [(0, 0), (0, 0), (0, Qpad - Q), (0, 0), (0, 0)])
    # lane-dense, query-folded layout: (B, T, h, Qpad*w)
    pred_l = jnp.transpose(pred_lo, (0, 1, 3, 2, 4)).reshape(B, T, h, Qpad * w)

    # target relayout: shared across levels / aux calls via tgt_cache
    if tgt_cache is not None and Qpad in tgt_cache:
        tgt_l = tgt_cache[Qpad]
    else:
        tgt_l = _prepare_target_layout(target, Qpad)
        if tgt_cache is not None:
            tgt_cache[Qpad] = tgt_l

    ry = jnp.asarray(_resize_matrix(h, H))                     # (H, h)
    rxT = _resize_matrix(w, W).T                               # (w, W)
    rx_blk = jnp.asarray(np.kron(np.eye(Qb, dtype=np.float32), rxT))  # (Qb*w, Qb*W)

    Lw = Qb * w
    L = Qb * W

    args = [ry, rx_blk]
    if needs_mask:
        qvalid = (np.arange(Qpad) < Q).astype(np.float32)
        mask = jnp.asarray(np.repeat(qvalid, W).reshape(QB, 1, L))
        args.append(mask)
    args += [pred_l, tgt_l]

    kernel = _make_kernel(float(focal_alpha), needs_mask)

    def build_call(single_buffer_consts: bool):
        def const_spec(shape):
            # constant index map -> no benefit from double buffering
            if single_buffer_consts:
                return pl.BlockSpec(shape, lambda b, qb: (0, 0),
                                    pipeline_mode=pl.Buffered(1))
            return pl.BlockSpec(shape, lambda b, qb: (0, 0))

        in_specs = [const_spec((H, h)), const_spec((Lw, L))]
        if needs_mask:
            # mask block index varies with qb -> keep default buffering
            in_specs.append(pl.BlockSpec((None, 1, L), lambda b, qb: (qb, 0, 0)))
        in_specs += [
            pl.BlockSpec((None, T, h, Lw), lambda b, qb: (b, 0, 0, qb)),
            pl.BlockSpec((None, T, H, L), lambda b, qb: (b, 0, 0, qb)),
        ]
        return pl.pallas_call(
            kernel,
            grid=(B, QB),
            in_specs=in_specs,
            out_specs=pl.BlockSpec((None, None, 8, L), lambda b, qb: (b, qb, 0, 0)),
            out_shape=jax.ShapeDtypeStruct((B, QB, 8, L), jnp.float32),
            compiler_params=pltpu.CompilerParams(
                dimension_semantics=("parallel", "parallel"),
                vmem_limit_bytes=int(limit)),
        )

    if _BUFFERED_CONSTS["enabled"]:
        try:
            partials = build_call(True)(*args)
        except Exception:
            # TODO(synk): pl.Buffered(1) pipeline_mode rejected by this
            # jax/libtpu; fall back to default double-buffered constants.
            _BUFFERED_CONSTS["enabled"] = False
            partials = build_call(False)(*args)
    else:
        partials = build_call(False)(*args)

    # tiny final reduction + loss assembly as JAX glue
    sums = partials[:, :, :5, :].sum(axis=(1, 3))              # (B, 5)
    denom = float(B * T * Q * H * W)
    focal_loss = sums[:, 0].sum() / denom
    prob_b, prod_b, tgt_b = sums[:, 1], sums[:, 2], sums[:, 3]
    dice_loss = (1.0 - (2.0 * prod_b + 1.0) / (prob_b + tgt_b + 1.0)).mean()
    # TODO(synk): for T == 1 PyTorch's slice-based L1 mean is over an empty
    # tensor (NaN); we keep the previous convention of returning 0.
    temporal_loss = sums[:, 4].sum() / float(B * max(T - 1, 1) * Q * H * W)
    return focal_loss, dice_loss, temporal_loss


# ----------------------------------------------------------------------------
# Pure-JAX reference of the same math (for the spot checks in __main__)
# ----------------------------------------------------------------------------
def _ref_mask_losses(pred_lo, target, focal_alpha=0.25):
    B, T, Q, h, w = pred_lo.shape
    H, W = target.shape[-2:]
    ry = jnp.asarray(_resize_matrix(h, H))
    rx = jnp.asarray(_resize_matrix(w, W))
    x = jnp.einsum('Hh,btqhw,Ww->btqHW', ry, pred_lo, rx,
                   precision=jax.lax.Precision.HIGHEST)
    prob = jax.nn.sigmoid(x)
    ce = jnp.maximum(x, 0.0) - x * target + jnp.log1p(jnp.exp(-jnp.abs(x)))
    p_t = prob * target + (1.0 - prob) * (1.0 - target)
    alpha_t = focal_alpha * target + (1.0 - focal_alpha) * (1.0 - target)
    focal = (alpha_t * ce * (1.0 - p_t) ** 2).mean()
    pf = prob.reshape(B, -1)
    tf = target.reshape(B, -1)
    dice = (1.0 - (2.0 * (pf * tf).sum(1) + 1.0) / (pf.sum(1) + tf.sum(1) + 1.0)).mean()
    temporal = jnp.abs((prob[:, 1:] - prob[:, :-1])
                       - (target[:, 1:] - target[:, :-1])).mean()
    return focal, dice, temporal


# ----------------------------------------------------------------------------
# SetCriterion port (mask losses only; classification/box losses are not part
# of this module's forward).
# ----------------------------------------------------------------------------
class SetCriterionPallas:
    def __init__(self, weight_dict, losses, focal_alpha=0.25,
                 mask_out_stride=4, num_frames=1):
        self.weight_dict = weight_dict
        self.losses = losses
        self.focal_alpha = focal_alpha
        self.mask_out_stride = mask_out_stride
        self.num_frames = num_frames
        self.valid_ratios = None

    def _stack_targets(self, src_masks, targets):
        bs = len(targets)
        num_frames = len(src_masks)
        # nested_tensor_from_tensor_list(..., size_divisibility=32): targets in
        # this synthetic setup are generated at a 32-divisible size, so the
        # zero-padding step is the identity.
        # TODO(synk): general ragged-size / size_divisibility padding path not implemented.
        target_masks = jnp.stack([t['masks'] for t in targets], axis=0).astype(jnp.float32)
        im_h, im_w = target_masks.shape[-2:]
        return target_masks.reshape(bs, num_frames, -1, im_h, im_w)

    def loss_masks(self, outputs, targets, target_masks=None, tgt_cache=None):
        assert 'pred_masks' in outputs
        src_masks = outputs['pred_masks']        # list[T] of list[L] of (B,Q,h_l,w_l)
        bs = len(targets)
        num_frames = len(src_masks)
        num_feature = len(src_masks[0])
        out_src_masks = [
            jnp.concatenate([src_masks[t][i] for t in range(num_frames)], axis=1)
            for i in range(num_feature)
        ]
        if target_masks is None:
            target_masks = self._stack_targets(src_masks, targets)
        if tgt_cache is None:
            tgt_cache = {}

        losses = {}
        for i, out_src_mask in enumerate(out_src_masks):
            h, w = out_src_mask.shape[-2:]
            pred_lo = out_src_mask.reshape(bs, num_frames, -1, h, w)
            # upstream sigmoid_focal_loss is called with its default alpha=0.25
            focal, dice, temporal = mask_losses_pallas(
                pred_lo, target_masks, focal_alpha=0.25, tgt_cache=tgt_cache)
            losses['loss_mask' + f'_{i}'] = focal
            losses[f'loss_dice_{i}'] = dice
            losses[f'loss_temporal_{i}'] = temporal
        return losses

    def forward(self, outputs, targets, valid_ratios):
        self.valid_ratios = valid_ratios
        # Hoist the target stacking + query-folded int8 relayout out of the
        # per-level and per-aux loops: computed once here, reused everywhere.
        target_masks = self._stack_targets(outputs['pred_masks'], targets)
        tgt_cache = {}
        losses = {}
        for loss in self.losses:
            losses.update(self.loss_masks(outputs, targets, target_masks, tgt_cache))
        if 'aux_outputs' in outputs:
            for i, aux_outputs in enumerate(outputs['aux_outputs']):
                for loss in self.losses:
                    l_dict = self.loss_masks(aux_outputs, targets,
                                             target_masks, tgt_cache)
                    l_dict = {k + f'_{i}': v for k, v in l_dict.items()}
                    losses.update(l_dict)
        return losses

    __call__ = forward


# ----------------------------------------------------------------------------
if __name__ == "__main__":
    B, T, Q = 2, 2, 1
    H = W = 32
    level_sizes = [(8, 8), (16, 16)]

    key = jax.random.PRNGKey(0)
    kp, ka, kt = jax.random.split(key, 3)

    def make_pred(k):
        preds = []
        for t in range(T):
            lvl = []
            for li, (h, w) in enumerate(level_sizes):
                kk = jax.random.fold_in(k, t * 8 + li)
                lvl.append(jax.random.normal(kk, (B, Q, h, w), jnp.float32))
            preds.append(lvl)
        return preds

    outputs = {
        'pred_masks': make_pred(kp),
        'aux_outputs': [{'pred_masks': make_pred(jax.random.fold_in(ka, 0))}],
    }
    targets = [
        {'masks': (jax.random.uniform(jax.random.fold_in(kt, b), (T * Q, H, W))
                   > 0.5).astype(jnp.float32)}
        for b in range(B)
    ]
    valid_ratios = jnp.ones((B, 4, 2), jnp.float32)  # unused by the mask losses

    weight_dict = {'loss_mask': 1.0, 'loss_dice': 1.0, 'loss_temporal': 1.0}
    criterion = SetCriterionPallas(weight_dict, losses=['masks'],
                                   focal_alpha=0.25, mask_out_stride=4,
                                   num_frames=T)

    loss_dict = criterion(outputs, targets, valid_ratios)
    loss_dict = {k: jax.block_until_ready(v) for k, v in loss_dict.items()}

    # spot-check level 0 of the main outputs against a pure-JAX reference
    pred0 = jnp.concatenate([outputs['pred_masks'][t][0] for t in range(T)], axis=1)
    pred0 = pred0.reshape(B, T, -1, *level_sizes[0])
    tgt = jnp.stack([t['masks'] for t in targets], 0).reshape(B, T, -1, H, W)
    ref = _ref_mask_losses(pred0, tgt)
    got = (loss_dict['loss_mask_0'], loss_dict['loss_dice_0'],
           loss_dict['loss_temporal_0'])
    for r, g in zip(ref, got):
        np.testing.assert_allclose(np.asarray(g), np.asarray(r),
                                   rtol=2e-2, atol=2e-3)
    assert all(np.isfinite(np.asarray(v)) for v in loss_dict.values())

    # larger query count: default budget picks a single (non-128-multiple)
    # query block covering all 18 queries, no padding / mask path
    Qbig = 18
    kb = jax.random.fold_in(key, 123)
    pred_big = jax.random.normal(jax.random.fold_in(kb, 0),
                                 (B, T, Qbig, 8, 8), jnp.float32)
    tgt_big = (jax.random.uniform(jax.random.fold_in(kb, 1),
                                  (B, T, Qbig, H, W)) > 0.5).astype(jnp.float32)
    ref_big = _ref_mask_losses(pred_big, tgt_big)

    got_big = mask_losses_pallas(pred_big, tgt_big)
    got_big = tuple(jax.block_until_ready(v) for v in got_big)
    for r, g in zip(ref_big, got_big):
        np.testing.assert_allclose(np.asarray(g), np.asarray(r),
                                   rtol=2e-2, atol=2e-3)

    # exercise the multi-query-block + padding/mask fallback by forcing a tiny
    # block-sizing budget (Qb -> 16, QB -> 2, padded/masked queries)
    got_forced = mask_losses_pallas(pred_big, tgt_big, vmem_budget_bytes=1 << 20)
    got_forced = tuple(jax.block_until_ready(v) for v in got_forced)
    for r, g in zip(ref_big, got_forced):
        np.testing.assert_allclose(np.asarray(g), np.asarray(r),
                                   rtol=2e-2, atol=2e-3)

    print("KERNEL_OK")
</pallas_src>

<mosaic_0001>
module attributes {stable_mosaic.version = 11 : i64} {
  func.func @kernel(%arg0: i32, %arg1: i32, %arg2: memref<32x8xf32, #tpu.memory_space<vmem>>, %arg3: memref<8x32xf32, #tpu.memory_space<vmem>>, %arg4: memref<1x2x8x8xf32, #tpu.memory_space<vmem>>, %arg5: memref<1x2x32x32xi8, #tpu.memory_space<vmem>>, %arg6: memref<1x1x8x32xf32, #tpu.memory_space<vmem>>) attributes {dimension_semantics = [#tpu.dimension_semantics<parallel>, #tpu.dimension_semantics<parallel>], iteration_bounds = array<i64: 2, 1>, scalar_prefetch = 0 : i64, scratch_operands = 0 : i64, tpu.core_type = #tpu.core_type<tc>, window_params = [{pipeline_mode = #tpu.pipeline_mode<synchronous>, transform_indices = @transform_0, window_bounds = array<i64: 32, 8>}, {pipeline_mode = #tpu.pipeline_mode<synchronous>, transform_indices = @transform_1, window_bounds = array<i64: 8, 32>}, {transform_indices = @transform_2, window_bounds = array<i64: 1, 2, 8, 8>}, {transform_indices = @transform_3, window_bounds = array<i64: 1, 2, 32, 32>}, {transform_indices = @transform_4, window_bounds = array<i64: 1, 1, 8, 32>}]} {
    %c0 = arith.constant 0 : index
    %c0_0 = arith.constant 0 : index
    %0 = vector.load %arg2[%c0, %c0_0] : memref<32x8xf32, #tpu.memory_space<vmem>>, vector<32x8xf32>
    %c0_1 = arith.constant 0 : index
    %c0_2 = arith.constant 0 : index
    %1 = vector.load %arg3[%c0_1, %c0_2] : memref<8x32xf32, #tpu.memory_space<vmem>>, vector<8x32xf32>
    %cst = arith.constant 0.000000e+00 : f32
    %2 = vector.broadcast %cst : f32 to vector<32x32xf32>
    %c0_3 = arith.constant 0 : index
    %c0_4 = arith.constant 0 : index
    %c0_5 = arith.constant 0 : index
    %c0_6 = arith.constant 0 : index
    %3 = vector.load %arg4[%c0_3, %c0_4, %c0_5, %c0_6] : memref<1x2x8x8xf32, #tpu.memory_space<vmem>>, vector<1x1x8x8xf32>
    %4 = vector.shape_cast %3 : vector<1x1x8x8xf32> to vector<8x8xf32>
    %c0_7 = arith.constant 0 : index
    %c0_8 = arith.constant 0 : index
    %c0_9 = arith.constant 0 : index
    %c0_10 = arith.constant 0 : index
    %5 = vector.load %arg5[%c0_7, %c0_8, %c0_9, %c0_10] : memref<1x2x32x32xi8, #tpu.memory_space<vmem>>, vector<1x1x32x32xi8>
    %6 = vector.shape_cast %5 : vector<1x1x32x32xi8> to vector<32x32xi8>
    %7 = arith.sitofp %6 : vector<32x32xi8> to vector<32x32xf32>
    %cst_11 = arith.constant dense<0.000000e+00> : vector<32x8xf32>
    %8 = tpu.matmul %0, %4, %cst_11 {dimension_numbers = #tpu.dot_dimension_numbers<[1], [0], [0], [1], [0, 0, 1, 1], [], []>} : vector<32x8xf32>, vector<8x8xf32>, vector<32x8xf32> -> vector<32x8xf32>
    %cst_12 = arith.constant dense<0.000000e+00> : vector<32x32xf32>
    %9 = tpu.matmul %8, %1, %cst_12 {dimension_numbers = #tpu.dot_dimension_numbers<[1], [0], [0], [1], [0, 0, 1, 1], [], []>} : vector<32x8xf32>, vector<8x32xf32>, vector<32x32xf32> -> vector<32x32xf32>
    %10 = math.absf %9 : vector<32x32xf32>
    %cst_13 = arith.constant 0.000000e+00 : f32
    %11 = vector.broadcast %cst_13 : f32 to vector<32x32xf32>
    %12 = arith.subf %11, %10 : vector<32x32xf32>
    %13 = math.exp %12 : vector<32x32xf32>
    %cst_14 = arith.constant 1.000000e+00 : f32
    %14 = vector.broadcast %cst_14 : f32 to vector<32x32xf32>
    %15 = arith.addf %14, %13 : vector<32x32xf32>
    %16 = tpu.reciprocal %15 {approx = true} : vector<32x32xf32> -> vector<32x32xf32>
    %cst_15 = arith.constant 0.000000e+00 : f32
    %17 = vector.broadcast %cst_15 : f32 to vector<32x32xf32>
    %18 = arith.cmpf oge, %9, %17 : vector<32x32xf32>
    %cst_16 = arith.constant 1.000000e+00 : f32
    %19 = vector.broadcast %cst_16 : f32 to vector<32x32xf32>
    %20 = arith.subf %19, %16 : vector<32x32xf32>
    %21 = arith.select %18, %16, %20 : vector<32x32xi1>, vector<32x32xf32>
    %cst_17 = arith.constant 5.000000e-01 : f32
    %22 = vector.broadcast %cst_17 : f32 to vector<32x32xf32>
    %23 = arith.cmpf ogt, %7, %22 : vector<32x32xf32>
    %cst_18 = arith.constant 0.000000e+00 : f32
    %24 = vector.broadcast %cst_18 : f32 to vector<32x32xf32>
    %25 = arith.maximumf %9, %24 : vector<32x32xf32>
    %26 = arith.mulf %9, %7 : vector<32x32xf32>
    %27 = arith.subf %25, %26 : vector<32x32xf32>
    %28 = math.log1p %13 : vector<32x32xf32>
    %29 = arith.addf %27, %28 : vector<32x32xf32>
    %cst_19 = arith.constant 1.000000e+00 : f32
    %30 = vector.broadcast %cst_19 : f32 to vector<32x32xf32>
    %31 = arith.subf %30, %21 : vector<32x32xf32>
    %32 = arith.select %23, %31, %21 : vector<32x32xi1>, vector<32x32xf32>
    %cst_20 = arith.constant 2.500000e-01 : f32
    %cst_21 = arith.constant 7.500000e-01 : f32
    %33 = vector.broadcast %cst_20 : f32 to vector<32x32xf32>
    %34 = vector.broadcast %cst_21 : f32 to vector<32x32xf32>
    %35 = arith.select %23, %33, %34 : vector<32x32xi1>, vector<32x32xf32>
    %36 = arith.mulf %35, %29 : vector<32x32xf32>
    %37 = arith.mulf %36, %32 : vector<32x32xf32>
    %38 = arith.mulf %37, %32 : vector<32x32xf32>
    %39 = arith.addf %2, %38 : vector<32x32xf32>
    %40 = arith.addf %2, %21 : vector<32x32xf32>
    %41 = arith.mulf %21, %7 : vector<32x32xf32>
    %42 = arith.addf %2, %41 : vector<32x32xf32>
    %43 = arith.addf %2, %7 : vector<32x32xf32>
    %44 = arith.subf %21, %7 : vector<32x32xf32>
    %c0_22 = arith.constant 0 : index
    %c1 = arith.constant 1 : index
    %c0_23 = arith.constant 0 : index
    %c0_24 = arith.constant 0 : index
    %45 = vector.load %arg4[%c0_22, %c1, %c0_23, %c0_24] : memref<1x2x8x8xf32, #tpu.memory_space<vmem>>, vector<1x1x8x8xf32>
    %46 = vector.shape_cast %45 : vector<1x1x8x8xf32> to vector<8x8xf32>
    %c0_25 = arith.constant 0 : index
    %c1_26 = arith.constant 1 : index
    %c0_27 = arith.constant 0 : index
    %c0_28 = arith.constant 0 : index
    %47 = vector.load %arg5[%c0_25, %c1_26, %c0_27, %c0_28] : memref<1x2x32x32xi8, #tpu.memory_space<vmem>>, vector<1x1x32x32xi8>
    %48 = vector.shape_cast %47 : vector<1x1x32x32xi8> to vector<32x32xi8>
    %49 = arith.sitofp %48 : vector<32x32xi8> to vector<32x32xf32>
    %cst_29 = arith.constant dense<0.000000e+00> : vector<32x8xf32>
    %50 = tpu.matmul %0, %46, %cst_29 {dimension_numbers = #tpu.dot_dimension_numbers<[1], [0], [0], [1], [0, 0, 1, 1], [], []>} : vector<32x8xf32>, vector<8x8xf32>, vector<32x8xf32> -> vector<32x8xf32>
    %cst_30 = arith.constant dense<0.000000e+00> : vector<32x32xf32>
    %51 = tpu.matmul %50, %1, %cst_30 {dimension_numbers = #tpu.dot_dimension_numbers<[1], [0], [0], [1], [0, 0, 1, 1], [], []>} : vector<32x8xf32>, vector<8x32xf32>, vector<32x32xf32> -> vector<32x32xf32>
    %52 = math.absf %51 : vector<32x32xf32>
    %cst_31 = arith.constant 0.000000e+00 : f32
    %53 = vector.broadcast %cst_31 : f32 to vector<32x32xf32>
    %54 = arith.subf %53, %52 : vector<32x32xf32>
    %55 = math.exp %54 : vector<32x32xf32>
    %cst_32 = arith.constant 1.000000e+00 : f32
    %56 = vector.broadcast %cst_32 : f32 to vector<32x32xf32>
    %57 = arith.addf %56, %55 : vector<32x32xf32>
    %58 = tpu.reciprocal %57 {approx = true} : vector<32x32xf32> -> vector<32x32xf32>
    %cst_33 = arith.constant 0.000000e+00 : f32
    %59 = vector.broadcast %cst_33 : f32 to vector<32x32xf32>
    %60 = arith.cmpf oge, %51, %59 : vector<32x32xf32>
    %cst_34 = arith.constant 1.000000e+00 : f32
    %61 = vector.broadcast %cst_34 : f32 to vector<32x32xf32>
    %62 = arith.subf %61, %58 : vector<32x32xf32>
    %63 = arith.select %60, %58, %62 : vector<32x32xi1>, vector<32x32xf32>
    %cst_35 = arith.constant 5.000000e-01 : f32
    %64 = vector.broadcast %cst_35 : f32 to vector<32x32xf32>
    %65 = arith.cmpf ogt, %49, %64 : vector<32x32xf32>
    %cst_36 = arith.constant 0.000000e+00 : f32
    %66 = vector.broadcast %cst_36 : f32 to vector<32x32xf32>
    %67 = arith.maximumf %51, %66 : vector<32x32xf32>
    %68 = arith.mulf %51, %49 : vector<32x32xf32>
    %69 = arith.subf %67, %68 : vector<32x32xf32>
    %70 = math.log1p %55 : vector<32x32xf32>
    %71 = arith.addf %69, %70 : vector<32x32xf32>
    %cst_37 = arith.constant 1.000000e+00 : f32
    %72 = vector.broadcast %cst_37 : f32 to vector<32x32xf32>
    %73 = arith.subf %72, %63 : vector<32x32xf32>
    %74 = arith.select %65, %73, %63 : vector<32x32xi1>, vector<32x32xf32>
    %cst_38 = arith.constant 2.500000e-01 : f32
    %cst_39 = arith.constant 7.500000e-01 : f32
    %75 = vector.broadcast %cst_38 : f32 to vector<32x32xf32>
    %76 = vector.broadcast %cst_39 : f32 to vector<32x32xf32>
    %77 = arith.select %65, %75, %76 : vector<32x32xi1>, vector<32x32xf32>
    %78 = arith.mulf %77, %71 : vector<32x32xf32>
    %79 = arith.mulf %78, %74 : vector<32x32xf32>
    %80 = arith.mulf %79, %74 : vector<32x32xf32>
    %81 = arith.addf %39, %80 : vector<32x32xf32>
    %82 = arith.addf %40, %63 : vector<32x32xf32>
    %83 = arith.mulf %63, %49 : vector<32x32xf32>
    %84 = arith.addf %42, %83 : vector<32x32xf32>
    %85 = arith.addf %43, %49 : vector<32x32xf32>
    %86 = arith.subf %63, %49 : vector<32x32xf32>
    %87 = arith.subf %86, %44 : vector<32x32xf32>
    %88 = math.absf %87 : vector<32x32xf32>
    %89 = arith.addf %2, %88 : vector<32x32xf32>
    %cst_40 = arith.constant dense<0.000000e+00> : vector<32xf32>
    %90 = vector.multi_reduction <add>, %81, %cst_40 [0] : vector<32x32xf32> to vector<32xf32>
    %91 = vector.shape_cast %90 : vector<32xf32> to vector<1x32xf32>
    %c0_41 = arith.constant 0 : index
    %c0_42 = arith.constant 0 : index
    %c0_43 = arith.constant 0 : index
    %c0_44 = arith.constant 0 : index
    %92 = vector.load %arg6[%c0_41, %c0_42, %c0_43, %c0_44] : memref<1x1x8x32xf32, #tpu.memory_space<vmem>>, vector<1x1x1x32xf32>
    %93 = vector.shape_cast %92 : vector<1x1x1x32xf32> to vector<1x32xf32>
    %94 = vector.shape_cast %91 : vector<1x32xf32> to vector<1x1x1x32xf32>
    tpu.vector_store %arg6[%c0_41, %c0_42, %c0_43, %c0_44], %94 {strides = array<i32>} : memref<1x1x8x32xf32, #tpu.memory_space<vmem>>, vector<1x1x1x32xf32>,
    %cst_45 = arith.constant dense<0.000000e+00> : vector<32xf32>
    %95 = vector.multi_reduction <add>, %82, %cst_45 [0] : vector<32x32xf32> to vector<32xf32>
    %96 = vector.shape_cast %95 : vector<32xf32> to vector<1x32xf32>
    %c0_46 = arith.constant 0 : index
    %c0_47 = arith.constant 0 : index
    %c1_48 = arith.constant 1 : index
    %c0_49 = arith.constant 0 : index
    %97 = vector.load %arg6[%c0_46, %c0_47, %c1_48, %c0_49] : memref<1x1x8x32xf32, #tpu.memory_space<vmem>>, vector<1x1x1x32xf32>
    %98 = vector.shape_cast %97 : vector<1x1x1x32xf32> to vector<1x32xf32>
    %99 = vector.shape_cast %96 : vector<1x32xf32> to vector<1x1x1x32xf32>
    tpu.vector_store %arg6[%c0_46, %c0_47, %c1_48, %c0_49], %99 {strides = array<i32>} : memref<1x1x8x32xf32, #tpu.memory_space<vmem>>, vector<1x1x1x32xf32>,
    %cst_50 = arith.constant dense<0.000000e+00> : vector<32xf32>
    %100 = vector.multi_reduction <add>, %84, %cst_50 [0] : vector<32x32xf32> to vector<32xf32>
    %101 = vector.shape_cast %100 : vector<32xf32> to vector<1x32xf32>
    %c0_51 = arith.constant 0 : index
    %c0_52 = arith.constant 0 : index
    %c2 = arith.constant 2 : index
    %c0_53 = arith.constant 0 : index
    %102 = vector.load %arg6[%c0_51, %c0_52, %c2, %c0_53] : memref<1x1x8x32xf32, #tpu.memory_space<vmem>>, vector<1x1x1x32xf32>
    %103 = vector.shape_cast %102 : vector<1x1x1x32xf32> to vector<1x32xf32>
    %104 = vector.shape_cast %101 : vector<1x32xf32> to vector<1x1x1x32xf32>
    tpu.vector_store %arg6[%c0_51, %c0_52, %c2, %c0_53], %104 {strides = array<i32>} : memref<1x1x8x32xf32, #tpu.memory_space<vmem>>, vector<1x1x1x32xf32>,
    %cst_54 = arith.constant dense<0.000000e+00> : vector<32xf32>
    %105 = vector.multi_reduction <add>, %85, %cst_54 [0] : vector<32x32xf32> to vector<32xf32>
    %106 = vector.shape_cast %105 : vector<32xf32> to vector<1x32xf32>
    %c0_55 = arith.constant 0 : index
    %c0_56 = arith.constant 0 : index
    %c3 = arith.constant 3 : index
    %c0_57 = arith.constant 0 : index
    %107 = vector.load %arg6[%c0_55, %c0_56, %c3, %c0_57] : memref<1x1x8x32xf32, #tpu.memory_space<vmem>>, vector<1x1x1x32xf32>
    %108 = vector.shape_cast %107 : vector<1x1x1x32xf32> to vector<1x32xf32>
    %109 = vector.shape_cast %106 : vector<1x32xf32> to vector<1x1x1x32xf32>
    tpu.vector_store %arg6[%c0_55, %c0_56, %c3, %c0_57], %109 {strides = array<i32>} : memref<1x1x8x32xf32, #tpu.memory_space<vmem>>, vector<1x1x1x32xf32>,
    %cst_58 = arith.constant dense<0.000000e+00> : vector<32xf32>
    %110 = vector.multi_reduction <add>, %89, %cst_58 [0] : vector<32x32xf32> to vector<32xf32>
    %111 = vector.shape_cast %110 : vector<32xf32> to vector<1x32xf32>
    %c0_59 = arith.constant 0 : index
    %c0_60 = arith.constant 0 : index
    %c4 = arith.constant 4 : index
    %c0_61 = arith.constant 0 : index
    %112 = vector.load %arg6[%c0_59, %c0_60, %c4, %c0_61] : memref<1x1x8x32xf32, #tpu.memory_space<vmem>>, vector<1x1x1x32xf32>
    %113 = vector.shape_cast %112 : vector<1x1x1x32xf32> to vector<1x32xf32>
    %114 = vector.shape_cast %111 : vector<1x32xf32> to vector<1x1x1x32xf32>
    tpu.vector_store %arg6[%c0_59, %c0_60, %c4, %c0_61], %114 {strides = array<i32>} : memref<1x1x8x32xf32, #tpu.memory_space<vmem>>, vector<1x1x1x32xf32>,
    %cst_62 = arith.constant 0.000000e+00 : f32
    %115 = vector.broadcast %cst_62 : f32 to vector<3x32xf32>
    %c0_63 = arith.constant 0 : index
    %c0_64 = arith.constant 0 : index
    %c5 = arith.constant 5 : index
    %c0_65 = arith.constant 0 : index
    %116 = vector.load %arg6[%c0_63, %c0_64, %c5, %c0_65] : memref<1x1x8x32xf32, #tpu.memory_space<vmem>>, vector<1x1x3x32xf32>
    %117 = vector.shape_cast %116 : vector<1x1x3x32xf32> to vector<3x32xf32>
    %118 = vector.shape_cast %115 : vector<3x32xf32> to vector<1x1x3x32xf32>
    tpu.vector_store %arg6[%c0_63, %c0_64, %c5, %c0_65], %118 {strides = array<i32>} : memref<1x1x8x32xf32, #tpu.memory_space<vmem>>, vector<1x1x3x32xf32>,
    return
  }
  func.func @transform_0(%arg0: i32, %arg1: i32) -> (i32, i32) {
    %c0_i32 = arith.constant 0 : i32
    %c0_i32_0 = arith.constant 0 : i32
    %c0_i32_1 = arith.constant 0 : i32
    return %c0_i32, %c0_i32_0 : i32, i32
  }
  func.func @transform_1(%arg0: i32, %arg1: i32) -> (i32, i32) {
    %c0_i32 = arith.constant 0 : i32
    %c0_i32_0 = arith.constant 0 : i32
    %c0_i32_1 = arith.constant 0 : i32
    return %c0_i32, %c0_i32_0 : i32, i32
  }
  func.func @transform_2(%arg0: i32, %arg1: i32) -> (i32, i32, i32, i32) {
    %c0_i32 = arith.constant 0 : i32
    %c0_i32_0 = arith.constant 0 : i32
    %c0_i32_1 = arith.constant 0 : i32
    return %arg0, %c0_i32, %c0_i32_0, %arg1 : i32, i32, i32, i32
  }
  func.func @transform_3(%arg0: i32, %arg1: i32) -> (i32, i32, i32, i32) {
    %c0_i32 = arith.constant 0 : i32
    %c0_i32_0 = arith.constant 0 : i32
    %c0_i32_1 = arith.constant 0 : i32
    return %arg0, %c0_i32, %c0_i32_0, %arg1 : i32, i32, i32, i32
  }
  func.func @transform_4(%arg0: i32, %arg1: i32) -> (i32, i32, i32, i32) {
    %c0_i32 = arith.constant 0 : i32
    %c0_i32_0 = arith.constant 0 : i32
    %c0_i32_1 = arith.constant 0 : i32
    return %arg0, %arg1, %c0_i32, %c0_i32_0 : i32, i32, i32, i32
  }
}

module attributes {stable_mosaic.version = 11 : i64} {
  func.func @kernel(%arg0: i32, %arg1: i32, %arg2: memref<32x8xf32, #tpu.memory_space<vmem>>, %arg3: memref<8x32xf32, #tpu.memory_space<vmem>>, %arg4: memref<1x2x8x8xf32, #tpu.memory_space<vmem>>, %arg5: memref<1x2x32x32xi8, #tpu.memory_space<vmem>>, %arg6: memref<1x1x8x32xf32, #tpu.memory_space<vmem>>) attributes {dimension_semantics = [#tpu.dimension_semantics<parallel>, #tpu.dimension_semantics<parallel>], iteration_bounds = array<i64: 2, 1>, scalar_prefetch = 0 : i64, scratch_operands = 0 : i64, tpu.core_type = #tpu.core_type<tc>, window_params = [{pipeline_mode = #tpu.pipeline_mode<synchronous>, transform_indices = @transform_0, window_bounds = array<i64: 32, 8>}, {pipeline_mode = #tpu.pipeline_mode<synchronous>, transform_indices = @transform_1, window_bounds = array<i64: 8, 32>}, {transform_indices = @transform_2, window_bounds = array<i64: 1, 2, 8, 8>}, {transform_indices = @transform_3, window_bounds = array<i64: 1, 2, 32, 32>}, {transform_indices = @transform_4, window_bounds = array<i64: 1, 1, 8, 32>}]} {
    %c0 = arith.constant 0 : index
    %c0_0 = arith.constant 0 : index
    %0 = vector.load %arg2[%c0, %c0_0] : memref<32x8xf32, #tpu.memory_space<vmem>>, vector<32x8xf32>
    %c0_1 = arith.constant 0 : index
    %c0_2 = arith.constant 0 : index
    %1 = vector.load %arg3[%c0_1, %c0_2] : memref<8x32xf32, #tpu.memory_space<vmem>>, vector<8x32xf32>
    %cst = arith.constant 0.000000e+00 : f32
    %2 = vector.broadcast %cst : f32 to vector<32x32xf32>
    %c0_3 = arith.constant 0 : index
    %c0_4 = arith.constant 0 : index
    %c0_5 = arith.constant 0 : index
    %c0_6 = arith.constant 0 : index
    %3 = vector.load %arg4[%c0_3, %c0_4, %c0_5, %c0_6] : memref<1x2x8x8xf32, #tpu.memory_space<vmem>>, vector<1x1x8x8xf32>
    %4 = vector.shape_cast %3 : vector<1x1x8x8xf32> to vector<8x8xf32>
    %c0_7 = arith.constant 0 : index
    %c0_8 = arith.constant 0 : index
    %c0_9 = arith.constant 0 : index
    %c0_10 = arith.constant 0 : index
    %5 = vector.load %arg5[%c0_7, %c0_8, %c0_9, %c0_10] : memref<1x2x32x32xi8, #tpu.memory_space<vmem>>, vector<1x1x32x32xi8>
    %6 = vector.shape_cast %5 : vector<1x1x32x32xi8> to vector<32x32xi8>
    %7 = arith.sitofp %6 : vector<32x32xi8> to vector<32x32xf32>
    %cst_11 = arith.constant dense<0.000000e+00> : vector<32x8xf32>
    %8 = tpu.matmul %0, %4, %cst_11 {dimension_numbers = #tpu.dot_dimension_numbers<[1], [0], [0], [1], [0, 0, 1, 1], [], []>} : vector<32x8xf32>, vector<8x8xf32>, vector<32x8xf32> -> vector<32x8xf32>
    %cst_12 = arith.constant dense<0.000000e+00> : vector<32x32xf32>
    %9 = tpu.matmul %8, %1, %cst_12 {dimension_numbers = #tpu.dot_dimension_numbers<[1], [0], [0], [1], [0, 0, 1, 1], [], []>} : vector<32x8xf32>, vector<8x32xf32>, vector<32x32xf32> -> vector<32x32xf32>
    %10 = math.absf %9 : vector<32x32xf32>
    %cst_13 = arith.constant 0.000000e+00 : f32
    %11 = vector.broadcast %cst_13 : f32 to vector<32x32xf32>
    %12 = arith.subf %11, %10 : vector<32x32xf32>
    %13 = math.exp %12 : vector<32x32xf32>
    %cst_14 = arith.constant 1.000000e+00 : f32
    %14 = vector.broadcast %cst_14 : f32 to vector<32x32xf32>
    %15 = arith.addf %14, %13 : vector<32x32xf32>
    %16 = tpu.reciprocal %15 {approx = true} : vector<32x32xf32> -> vector<32x32xf32>
    %cst_15 = arith.constant 0.000000e+00 : f32
    %17 = vector.broadcast %cst_15 : f32 to vector<32x32xf32>
    %18 = arith.cmpf oge, %9, %17 : vector<32x32xf32>
    %cst_16 = arith.constant 1.000000e+00 : f32
    %19 = vector.broadcast %cst_16 : f32 to vector<32x32xf32>
    %20 = arith.subf %19, %16 : vector<32x32xf32>
    %21 = arith.select %18, %16, %20 : vector<32x32xi1>, vector<32x32xf32>
    %cst_17 = arith.constant 5.000000e-01 : f32
    %22 = vector.broadcast %cst_17 : f32 to vector<32x32xf32>
    %23 = arith.cmpf ogt, %7, %22 : vector<32x32xf32>
    %cst_18 = arith.constant 0.000000e+00 : f32
    %24 = vector.broadcast %cst_18 : f32 to vector<32x32xf32>
    %25 = arith.maximumf %9, %24 : vector<32x32xf32>
    %26 = arith.mulf %9, %7 : vector<32x32xf32>
    %27 = arith.subf %25, %26 : vector<32x32xf32>
    %28 = math.log1p %13 : vector<32x32xf32>
    %29 = arith.addf %27, %28 : vector<32x32xf32>
    %cst_19 = arith.constant 1.000000e+00 : f32
    %30 = vector.broadcast %cst_19 : f32 to vector<32x32xf32>
    %31 = arith.subf %30, %21 : vector<32x32xf32>
    %32 = arith.select %23, %31, %21 : vector<32x32xi1>, vector<32x32xf32>
    %cst_20 = arith.constant 2.500000e-01 : f32
    %cst_21 = arith.constant 7.500000e-01 : f32
    %33 = vector.broadcast %cst_20 : f32 to vector<32x32xf32>
    %34 = vector.broadcast %cst_21 : f32 to vector<32x32xf32>
    %35 = arith.select %23, %33, %34 : vector<32x32xi1>, vector<32x32xf32>
    %36 = arith.mulf %35, %29 : vector<32x32xf32>
    %37 = arith.mulf %36, %32 : vector<32x32xf32>
    %38 = arith.mulf %37, %32 : vector<32x32xf32>
    %39 = arith.addf %2, %38 : vector<32x32xf32>
    %40 = arith.addf %2, %21 : vector<32x32xf32>
    %41 = arith.mulf %21, %7 : vector<32x32xf32>
    %42 = arith.addf %2, %41 : vector<32x32xf32>
    %43 = arith.addf %2, %7 : vector<32x32xf32>
    %44 = arith.subf %21, %7 : vector<32x32xf32>
    %c0_22 = arith.constant 0 : index
    %c1 = arith.constant 1 : index
    %c0_23 = arith.constant 0 : index
    %c0_24 = arith.constant 0 : index
    %45 = vector.load %arg4[%c0_22, %c1, %c0_23, %c0_24] : memref<1x2x8x8xf32, #tpu.memory_space<vmem>>, vector<1x1x8x8xf32>
    %46 = vector.shape_cast %45 : vector<1x1x8x8xf32> to vector<8x8xf32>
    %c0_25 = arith.constant 0 : index
    %c1_26 = arith.constant 1 : index
    %c0_27 = arith.constant 0 : index
    %c0_28 = arith.constant 0 : index
    %47 = vector.load %arg5[%c0_25, %c1_26, %c0_27, %c0_28] : memref<1x2x32x32xi8, #tpu.memory_space<vmem>>, vector<1x1x32x32xi8>
    %48 = vector.shape_cast %47 : vector<1x1x32x32xi8> to vector<32x32xi8>
    %49 = arith.sitofp %48 : vector<32x32xi8> to vector<32x32xf32>
    %cst_29 = arith.constant dense<0.000000e+00> : vector<32x8xf32>
    %50 = tpu.matmul %0, %46, %cst_29 {dimension_numbers = #tpu.dot_dimension_numbers<[1], [0], [0], [1], [0, 0, 1, 1], [], []>} : vector<32x8xf32>, vector<8x8xf32>, vector<32x8xf32> -> vector<32x8xf32>
    %cst_30 = arith.constant dense<0.000000e+00> : vector<32x32xf32>
    %51 = tpu.matmul %50, %1, %cst_30 {dimension_numbers = #tpu.dot_dimension_numbers<[1], [0], [0], [1], [0, 0, 1, 1], [], []>} : vector<32x8xf32>, vector<8x32xf32>, vector<32x32xf32> -> vector<32x32xf32>
    %52 = math.absf %51 : vector<32x32xf32>
    %cst_31 = arith.constant 0.000000e+00 : f32
    %53 = vector.broadcast %cst_31 : f32 to vector<32x32xf32>
    %54 = arith.subf %53, %52 : vector<32x32xf32>
    %55 = math.exp %54 : vector<32x32xf32>
    %cst_32 = arith.constant 1.000000e+00 : f32
    %56 = vector.broadcast %cst_32 : f32 to vector<32x32xf32>
    %57 = arith.addf %56, %55 : vector<32x32xf32>
    %58 = tpu.reciprocal %57 {approx = true} : vector<32x32xf32> -> vector<32x32xf32>
    %cst_33 = arith.constant 0.000000e+00 : f32
    %59 = vector.broadcast %cst_33 : f32 to vector<32x32xf32>
    %60 = arith.cmpf oge, %51, %59 : vector<32x32xf32>
    %cst_34 = arith.constant 1.000000e+00 : f32
    %61 = vector.broadcast %cst_34 : f32 to vector<32x32xf32>
    %62 = arith.subf %61, %58 : vector<32x32xf32>
    %63 = arith.select %60, %58, %62 : vector<32x32xi1>, vector<32x32xf32>
    %cst_35 = arith.constant 5.000000e-01 : f32
    %64 = vector.broadcast %cst_35 : f32 to vector<32x32xf32>
    %65 = arith.cmpf ogt, %49, %64 : vector<32x32xf32>
    %cst_36 = arith.constant 0.000000e+00 : f32
    %66 = vector.broadcast %cst_36 : f32 to vector<32x32xf32>
    %67 = arith.maximumf %51, %66 : vector<32x32xf32>
    %68 = arith.mulf %51, %49 : vector<32x32xf32>
    %69 = arith.subf %67, %68 : vector<32x32xf32>
    %70 = math.log1p %55 : vector<32x32xf32>
    %71 = arith.addf %69, %70 : vector<32x32xf32>
    %cst_37 = arith.constant 1.000000e+00 : f32
    %72 = vector.broadcast %cst_37 : f32 to vector<32x32xf32>
    %73 = arith.subf %72, %63 : vector<32x32xf32>
    %74 = arith.select %65, %73, %63 : vector<32x32xi1>, vector<32x32xf32>
    %cst_38 = arith.constant 2.500000e-01 : f32
    %cst_39 = arith.constant 7.500000e-01 : f32
    %75 = vector.broadcast %cst_38 : f32 to vector<32x32xf32>
    %76 = vector.broadcast %cst_39 : f32 to vector<32x32xf32>
    %77 = arith.select %65, %75, %76 : vector<32x32xi1>, vector<32x32xf32>
    %78 = arith.mulf %77, %71 : vector<32x32xf32>
    %79 = arith.mulf %78, %74 : vector<32x32xf32>
    %80 = arith.mulf %79, %74 : vector<32x32xf32>
    %81 = arith.addf %39, %80 : vector<32x32xf32>
    %82 = arith.addf %40, %63 : vector<32x32xf32>
    %83 = arith.mulf %63, %49 : vector<32x32xf32>
    %84 = arith.addf %42, %83 : vector<32x32xf32>
    %85 = arith.addf %43, %49 : vector<32x32xf32>
    %86 = arith.subf %63, %49 : vector<32x32xf32>
    %87 = arith.subf %86, %44 : vector<32x32xf32>
    %88 = math.absf %87 : vector<32x32xf32>
    %89 = arith.addf %2, %88 : vector<32x32xf32>
    %cst_40 = arith.constant dense<0.000000e+00> : vector<32xf32>
    %90 = vector.multi_reduction <add>, %81, %cst_40 [0] : vector<32x32xf32> to vector<32xf32>
    %91 = vector.shape_cast %90 : vector<32xf32> to vector<1x32xf32>
    %c0_41 = arith.constant 0 : index
    %c0_42 = arith.constant 0 : index
    %c0_43 = arith.constant 0 : index
    %c0_44 = arith.constant 0 : index
    %92 = vector.load %arg6[%c0_41, %c0_42, %c0_43, %c0_44] : memref<1x1x8x32xf32, #tpu.memory_space<vmem>>, vector<1x1x1x32xf32>
    %93 = vector.shape_cast %92 : vector<1x1x1x32xf32> to vector<1x32xf32>
    %94 = vector.shape_cast %91 : vector<1x32xf32> to vector<1x1x1x32xf32>
    tpu.vector_store %arg6[%c0_41, %c0_42, %c0_43, %c0_44], %94 {strides = array<i32>} : memref<1x1x8x32xf32, #tpu.memory_space<vmem>>, vector<1x1x1x32xf32>,
    %cst_45 = arith.constant dense<0.000000e+00> : vector<32xf32>
    %95 = vector.multi_reduction <add>, %82, %cst_45 [0] : vector<32x32xf32> to vector<32xf32>
    %96 = vector.shape_cast %95 : vector<32xf32> to vector<1x32xf32>
    %c0_46 = arith.constant 0 : index
    %c0_47 = arith.constant 0 : index
    %c1_48 = arith.constant 1 : index
    %c0_49 = arith.constant 0 : index
    %97 = vector.load %arg6[%c0_46, %c0_47, %c1_48, %c0_49] : memref<1x1x8x32xf32, #tpu.memory_space<vmem>>, vector<1x1x1x32xf32>
    %98 = vector.shape_cast %97 : vector<1x1x1x32xf32> to vector<1x32xf32>
    %99 = vector.shape_cast %96 : vector<1x32xf32> to vector<1x1x1x32xf32>
    tpu.vector_store %arg6[%c0_46, %c0_47, %c1_48, %c0_49], %99 {strides = array<i32>} : memref<1x1x8x32xf32, #tpu.memory_space<vmem>>, vector<1x1x1x32xf32>,
    %cst_50 = arith.constant dense<0.000000e+00> : vector<32xf32>
    %100 = vector.multi_reduction <add>, %84, %cst_50 [0] : vector<32x32xf32> to vector<32xf32>
    %101 = vector.shape_cast %100 : vector<32xf32> to vector<1x32xf32>
    %c0_51 = arith.constant 0 : index
    %c0_52 = arith.constant 0 : index
    %c2 = arith.constant 2 : index
    %c0_53 = arith.constant 0 : index
    %102 = vector.load %arg6[%c0_51, %c0_52, %c2, %c0_53] : memref<1x1x8x32xf32, #tpu.memory_space<vmem>>, vector<1x1x1x32xf32>
    %103 = vector.shape_cast %102 : vector<1x1x1x32xf32> to vector<1x32xf32>
    %104 = vector.shape_cast %101 : vector<1x32xf32> to vector<1x1x1x32xf32>
    tpu.vector_store %arg6[%c0_51, %c0_52, %c2, %c0_53], %104 {strides = array<i32>} : memref<1x1x8x32xf32, #tpu.memory_space<vmem>>, vector<1x1x1x32xf32>,
    %cst_54 = arith.constant dense<0.000000e+00> : vector<32xf32>
    %105 = vector.multi_reduction <add>, %85, %cst_54 [0] : vector<32x32xf32> to vector<32xf32>
    %106 = vector.shape_cast %105 : vector<32xf32> to vector<1x32xf32>
    %c0_55 = arith.constant 0 : index
    %c0_56 = arith.constant 0 : index
    %c3 = arith.constant 3 : index
    %c0_57 = arith.constant 0 : index
    %107 = vector.load %arg6[%c0_55, %c0_56, %c3, %c0_57] : memref<1x1x8x32xf32, #tpu.memory_space<vmem>>, vector<1x1x1x32xf32>
    %108 = vector.shape_cast %107 : vector<1x1x1x32xf32> to vector<1x32xf32>
    %109 = vector.shape_cast %106 : vector<1x32xf32> to vector<1x1x1x32xf32>
    tpu.vector_store %arg6[%c0_55, %c0_56, %c3, %c0_57], %109 {strides = array<i32>} : memref<1x1x8x32xf32, #tpu.memory_space<vmem>>, vector<1x1x1x32xf32>,
    %cst_58 = arith.constant dense<0.000000e+00> : vector<32xf32>
    %110 = vector.multi_reduction <add>, %89, %cst_58 [0] : vector<32x32xf32> to vector<32xf32>
    %111 = vector.shape_cast %110 : vector<32xf32> to vector<1x32xf32>
    %c0_59 = arith.constant 0 : index
    %c0_60 = arith.constant 0 : index
    %c4 = arith.constant 4 : index
    %c0_61 = arith.constant 0 : index
    %112 = vector.load %arg6[%c0_59, %c0_60, %c4, %c0_61] : memref<1x1x8x32xf32, #tpu.memory_space<vmem>>, vector<1x1x1x32xf32>
    %113 = vector.shape_cast %112 : vector<1x1x1x32xf32> to vector<1x32xf32>
    %114 = vector.shape_cast %111 : vector<1x32xf32> to vector<1x1x1x32xf32>
    tpu.vector_store %arg6[%c0_59, %c0_60, %c4, %c0_61], %114 {strides = array<i32>} : memref<1x1x8x32xf32, #tpu.memory_space<vmem>>, vector<1x1x1x32xf32>,
    %cst_62 = arith.constant 0.000000e+00 : f32
    %115 = vector.broadcast %cst_62 : f32 to vector<3x32xf32>
    %c0_63 = arith.constant 0 : index
    %c0_64 = arith.constant 0 : index
    %c5 = arith.constant 5 : index
    %c0_65 = arith.constant 0 : index
    %116 = vector.load %arg6[%c0_63, %c0_64, %c5, %c0_65] : memref<1x1x8x32xf32, #tpu.memory_space<vmem>>, vector<1x1x3x32xf32>
    %117 = vector.shape_cast %116 : vector<1x1x3x32xf32> to vector<3x32xf32>
    %118 = vector.shape_cast %115 : vector<3x32xf32> to vector<1x1x3x32xf32>
    tpu.vector_store %arg6[%c0_63, %c0_64, %c5, %c0_65], %118 {strides = array<i32>} : memref<1x1x8x32xf32, #tpu.memory_space<vmem>>, vector<1x1x3x32xf32>,
    return
  }
  func.func @transform_0(%arg0: i32, %arg1: i32) -> (i32, i32) {
    %c0_i32 = arith.constant 0 : i32
    %c0_i32_0 = arith.constant 0 : i32
    %c0_i32_1 = arith.constant 0 : i32
    return %c0_i32, %c0_i32_0 : i32, i32
  }
  func.func @transform_1(%arg0: i32, %arg1: i32) -> (i32, i32) {
    %c0_i32 = arith.constant 0 : i32
    %c0_i32_0 = arith.constant 0 : i32
    %c0_i32_1 = arith.constant 0 : i32
    return %c0_i32, %c0_i32_0 : i32, i32
  }
  func.func @transform_2(%arg0: i32, %arg1: i32) -> (i32, i32, i32, i32) {
    %c0_i32 = arith.constant 0 : i32
    %c0_i32_0 = arith.constant 0 : i32
    %c0_i32_1 = arith.constant 0 : i32
    return %arg0, %c0_i32, %c0_i32_0, %arg1 : i32, i32, i32, i32
  }
  func.func @transform_3(%arg0: i32, %arg1: i32) -> (i32, i32, i32, i32) {
    %c0_i32 = arith.constant 0 : i32
    %c0_i32_0 = arith.constant 0 : i32
    %c0_i32_1 = arith.constant 0 : i32
    return %arg0, %c0_i32, %c0_i32_0, %arg1 : i32, i32, i32, i32
  }
  func.func @transform_4(%arg0: i32, %arg1: i32) -> (i32, i32, i32, i32) {
    %c0_i32 = arith.constant 0 : i32
    %c0_i32_0 = arith.constant 0 : i32
    %c0_i32_1 = arith.constant 0 : i32
    return %arg0, %arg1, %c0_i32, %c0_i32_0 : i32, i32, i32, i32
  }
}

</mosaic_0001>

<bundles_post_ra>
// kernel: tpu_custom_call.1
= control target key start
LH: loop header
LB: loop body
LE: loop exit
PB: predicated region body
PF: predicated region fallthrough
CT: control target
= control target key end

     0   :  { %9 = vsyncpa [#allocation3], 0  ;;  %s2066_s0 = inlined_call_operand.vmem [shape: f32[32,8], index: 0, kind: input, shape index: {}]   ;;  %s2067_s1 = inlined_call_operand.vmem [shape: f32[8,32], index: 1, kind: input, shape index: {}]   ;;  %s2068_s2 = inlined_call_operand.vmem [shape: f32[2,2,8,8], index: 2, kind: input, shape index: {}]   ;;  %s2069_s3 = inlined_call_operand.hbm [shape: s8[2,2,32,32], index: 3, kind: input, shape index: {}]   ;;  %s2070_s4 = inlined_call_operand.hbm [shape: f32[2,1,8,32], index: 4, kind: output, shape index: {}]  }
   0x1   :  { %11 = vsyncpa [#allocation3 + $0x1], 0 }
   0x2   :  { %12 = vsyncpa [#allocation4], 0 }
   0x3   :  { %14 = vsyncpa [#allocation4 + $0x1], 0  ;;  %s1495_s15 = smov 0   ;;  %s1497_s16 = smov 0  }
   0x4   :  { %s1499_s17 = smov 0   ;;  %s1501_s18 = smov 0  }
   0x5   :  { %s1503_s19 = smov 0   ;;  %s1505_s20 = smov 0  }
   0x6 LB: > { %s1148_s21 = sadd.s32 4294967295, %s1462_s20   ;;  %s1149_s22 = sadd.s32 4294967294, %s1462_s20   ;;  %s1462_s20 = sphi %s1505_s20, %s20_s20   ;;  %s1458_s19 = sphi %s1503_s19, %s2095_s19   ;;  %s1454_s18 = sphi %s1501_s18, %s2094_s18   ;;  %s1450_s17 = sphi %s1499_s17, %s2093_s17   ;;  %s1446_s16 = sphi %s1497_s16, %s2092_s16   ;;  %s1442_s15 = sphi %s1495_s15, %s2091_s15  }
   0x7   : > { %s32_s23 = sadd.s32 1, %s1458_s19  ;;  %s111_s24 = sadd.s32 1, %s1450_s17 }
   0x8   : > { %p34_p0 = scmp.ge.s32.totalorder %s32_s23, 2  ;;  %p118_p1 = scmp.ne.s32.totalorder %s1450_s17, %s1446_s16 }
   0x9   : > { %p119_p2 = scmp.eq.s32.totalorder %s1462_s20, 0  ;;  %p124_p3 = scmp.ne.s32.totalorder %s1446_s16, %s1442_s15 }
   0xa   : > { %s2097_s23 = smov (%p34_p0, %s32_s23), 0  ;;  %p125_p5 = scmp.eq.s32.totalorder %s1148_s21, 0 }
   0xb   : > { %p1536_p4 = por %p119_p2, %p118_p1  ;;  %s106_s26 = ssub.s32 %s1458_s19, %s2097_s23 }
   0xc   : > { %p150_p6 = scmp.eq.s32.totalorder %s1148_s21, 1  ;;  %p109_p7 = scmp.eq.s32.totalorder %s106_s26, 0 }
   0xd   : > { %p1542_p8 = por %p125_p5, %p124_p3  ;;  %p156_p10 = scmp.eq.s32.totalorder %s1149_s22, 1 }
   0xe   : > { %p1546_p9 = por %p150_p6, %p118_p1  ;;  %p1248_p13 = scmp.lt.s32.totalorder %s1462_s20, 2 }
   0xf   : > { %s1551_s29 = scalar_select %p109_p7, %s1450_s17, %s111_s24  }
  0x10   : > { %s2074_s28 = scalar_select %p1546_p9, 1, 0 }
  0x11   : > { %p1553_p11 = por %p156_p10, %p124_p3  ;;  %s193_s5 = sand.u32 1, %s1450_s17  }
  0x12   : > { %s1152_s6 = sshll.u32 %s193_s5, 4  ;;  %s1182_s7 = sshll.u32 %s1458_s19, 8 }
  0x13   : > { %s2075_s30 = scalar_select %p1553_p11, 1, 0 }
  0x14   : > { %s1564_s10 = scalar_lea.hbm %s2069_s3, %s1182_s7  ;;  %s197_s11 = scalar_lea.vmem [#allocation2], %s1152_s6 }
  0x15   : > { %s205_s12 = sshll.u32 %s197_s11, 4  ;;  %p1570_p0 = pnand %p1248_p13, %p1536_p4  ;;  %s1566_s12 = int_to_ptr.vmem [resolvable:$true] %s205_s12 }
  0x16   : > { %s1575_s14 = scalar_lea.sflag [#allocation3], %s193_s5  ;;  %s1350_s21 = scalar_lea.hbm %s1564_s10, 256 }
  0x17   : > { %p1351_p2 = scmp.ne.s32.totalorder %s1564_s10, %s1350_s21  ;;  %p1352_p3 = pneg %p1570_p0 }
  0x18   : > { %s1355_s25 = scalar_lea.hbm %s2069_s3, 512  ;;  %p1356_p4 = scmp.lt.u32.totalorder %s1564_s10, %s2069_s3 }
  0x19   : > { %p1353_p5 = pnand %p1352_p3, %p1351_p2  ;;  %p1357_p7 = scmp.lt.u32.totalorder %s1355_s25, %s1350_s21 }
  0x1a   : > { %p1359_p13 = scmp.lt.u32.totalorder %s1350_s21, %s1564_s10 }
  0x1b   : > { %p1354_p6 = pneg %p1353_p5  ;;  %p1358_p10 = por %p1357_p7, %p1356_p4 }
  0x1d   : > { %p1360_p12 = por %p1359_p13, %p1358_p10 }
  0x1f   : > { %p1361_p1 = pnand %p1360_p12, %p1354_p6 }
  0x21   : > { %1364 = shalt.err (!%p1361_p1)
}
  0x22   : > { %s1365_s5 = scalar_lea.vmem %s1566_s12, 256  ;;  %s1464_s7 = smov [#allocation2]  }
  0x23   : > { %p1366_p2 = scmp.ne.s32.totalorder %s1566_s12, %s1365_s5  ;;  %s1370_s8 = sshll.u32 %s1464_s7, 4  ;;  %s1371_s8 = int_to_ptr.vmem [resolvable:$false] %s1370_s8 }
  0x24   : > { %s1372_s9 = scalar_lea.vmem %s1371_s8, 512  ;;  %p1373_p9 = scmp.lt.s32.totalorder %s1566_s12, %s1371_s8 }
  0x25   : > { %p1368_p5 = pnand %p1366_p2, %p1352_p3  ;;  %p1374_p4 = scmp.lt.s32.totalorder %s1372_s9, %s1365_s5 }
  0x27   : > { %p1369_p11 = pneg %p1368_p5  ;;  %p1375_p7 = por %p1374_p4, %p1373_p9 }
  0x29   : > { %p1376_p10 = pnand %p1375_p7, %p1369_p11 }
  0x2b   : > { %1379 = shalt.err (!%p1376_p10)
}
  0x2c   : > { %s1465_s11 = smov 128   ;;  %s1466_s21 = smov 8  }
  0x2d   : > { %1243 = dma.hbm_to_vmem [thread:$0]  (!%p1570_p0), %s1564_s10, 256, %s1566_s12, %s1575_s14, %s1465_s11, %s1465_s11, %s1466_s21  }
  0x2e   : > { %p213_p12 = scmp.lt.s32.totalorder %s1462_s20, 3  ;;  %p2077_p1 = scmp.ge.s32.totalorder %s1462_s20, 1 }
  0x30   : > { %p214_p3 = pnand %p2077_p1, %p213_p12 }
  0x31   : > { %s1607_s22 = sand.u32 (!%p214_p3), 1, %s1446_s16  }
  0x32   : > { %217 = sbr.rel (%p214_p3) target bundleno = 617 (0x269), region = 36  ;;  %s1156_s24 = sshll.u32 (!%p214_p3), %s1607_s22, 4 }
  0x33   : > { %s220_s25 = scalar_lea.sflag (!%p214_p3), [#allocation3], %s1607_s22  ;;  %s1611_s26 = scalar_lea.vmem (!%p214_p3), [#allocation2], %s1156_s24 }
  0x39   : > { %1433 = dma.done.wait (%p1542_p8), %s220_s25, 256  }
  0x3a   : > { %1435 = vsyncadd (%p1542_p8), %s220_s25, 4294967040  ;;  %p256_p9 = scmp.lt.s32.totalorder %s1454_s18, 1  ;;  %vm279_vm0 = vcmask 64512   ;;  %v264_v1 = vld [vmem:[%s2066_s0] sm:$0xff]  ;;  %v265_v2 = vld [vmem:[%s2066_s0 + $0x8] sm:$0xff]  ;;  %vm960_vm1 = vcmask 261120  }
  0x3b   : > { %1206 = vmatprep.mubr.msk.f32.mxu0 %vm279_vm0, %v264_v1  ;;  %v266_v4 = vld [vmem:[%s2066_s0 + $0x10] sm:$0xff]  ;;  %v267_v5 = vld [vmem:[%s2066_s0 + $0x18] sm:$0xff]  ;;  %v268_v6 = vld [vmem:[%s2067_s1] sm:$0xff]  ;;  %vm974_vm2 = vcmask 253952   ;;  %vm1032_vm3 = vcmask 256000   ;;  %v1467_v50 = vmov 0.0  }
  0x3c   : > { %s257_s10 = scalar_select %p256_p9, %s1454_s18, 1  ;;  %1212 = vmatprep.subr.mxu1 %v268_v6  ;;  %v270_v15 = vld [vmem:[%s1611_s26] sm:$0xff]  ;;  %v1169_v16 = vld [vmem:[%s1611_s26 + $0x8] sm:$0xff] }
  0x3d   : > { %1213 = vmatpush3.msra.mxu1 %v268_v6  ;;  %v272_v17 = vunpack.c.1.s8 %v270_v15  ;;  %v271_v18 = vunpack.c.0.s8 %v270_v15  ;;  %v619_v19 = vunpack.c.1.s8 %v1169_v16  ;;  %v618_v20 = vunpack.c.0.s8 %v1169_v16  ;;  %s1157_s26 = sshll.u32 %s1607_s22, 3  ;;  %s1179_s13 = sshll.u32 %s1454_s18, 7 }
  0x3e   : > { %s1183_s12 = sshll.u32 %s257_s10, 4  ;;  %1228 = vmatprep.subr.mxu1 %v268_v6  ;;  %v274_v23 = vunpack.c.3.s8 %v270_v15  ;;  %v621_v26 = vunpack.c.3.s8 %v1169_v16  ;;  %v273_v27 = vunpack.c.2.s8 %v270_v15  ;;  %v620_v30 = vunpack.c.2.s8 %v1169_v16  ;;  %s2015_s7 = scalar_lea.hbm %s2070_s4, %s1179_s13 }
  0x3f   : > { %s263_s6 = scalar_lea.vmem %s2068_s2, %s1183_s12  ;;  %v1655_v21 = vcvt.s32.f32 %v272_v17  ;;  %v1657_v22 = vcvt.s32.f32 %v271_v18  ;;  %v1659_v24 = vcvt.s32.f32 %v619_v19  ;;  %v1661_v25 = vcvt.s32.f32 %v618_v20  ;;  %s1684_s12 = scalar_lea.vmem [#allocation5], %s1157_s26 }
  0x40   : > { %v269_v0 = vld [vmem:[%s263_s6] sm:$0xff]  ;;  %v1168_v3 = vld [vmem:[%s263_s6 + $0x8] sm:$0xff]  ;;  %v1667_v31 = vcvt.s32.f32 %v274_v23  ;;  %v1669_v32 = vcvt.s32.f32 %v621_v26  ;;  %v1671_v33 = vcvt.s32.f32 %v273_v27  ;;  %v1677_v37 = vcvt.s32.f32 %v620_v30  ;;  %1033 = vst.msk [vmem:[%s1684_s12 + $0x5] sm:$0x7] %vm1032_vm3, %v1467_v50  ;;  %s1049_s14 = sshll.u32 %s1684_s12, 4  ;;  %s1035_s8 = scalar_lea.sflag [#allocation4], %s1607_s22  ;;  %s2017_s14 = int_to_ptr.vmem [resolvable:$true] %s1049_s14 }
  0x41   : > { %1204 = vmatprep.subr.mxu0 %v269_v0  ;;  %v941_v28 = vadd.f32 %v1659_v24, %v1655_v21  ;;  %v940_v29 = vadd.f32 %v1661_v25, %v1657_v22  ;;  %vm511_vm4 = vcmp.gt.f32.partialorder %v1655_v21, 0.5  ;;  %vm510_vm5 = vcmp.gt.f32.partialorder %v1657_v22, 0.5  ;;  %s1380_s9 = scalar_lea.vmem %s2017_s14, 128  ;;  %p2088_p11 = scmp.ne.s32.totalorder %s2074_s28, 0 }
  0x42   : > { %1205 = vmatpush3.msra.mxu0 %v269_v0  ;;  %v943_v36 = vadd.f32 %v1669_v32, %v1667_v31  ;;  %v942_v38 = vadd.f32 %v1677_v37, %v1671_v33  ;;  %vm513_vm6 = vcmp.gt.f32.partialorder %v1667_v31, 0.5  ;;  %vm845_vm7 = vcmp.gt.f32.partialorder %v1659_v24, 0.5  ;;  %p1381_p8 = scmp.ne.s32.totalorder %s2017_s14, %s1380_s9  ;;  %s1469_s18 = smov [#allocation5]  }
  0x43   : > { %1207 = vmatmul.mubr.msk.f32.vlgmr.msra.gmra.mrb[0].mxu0 %vm279_vm0, %v265_v2  ;;  %1220 = vmatprep.subr.mxu0 %v1168_v3  ;;  %v1005_v34 = vsel %vm960_vm1, %v941_v28, 0.0  ;;  %v1004_v35 = vsel %vm960_vm1, %v940_v29, 0.0  ;;  %vm844_vm8 = vcmp.gt.f32.partialorder %v1661_v25, 0.5  ;;  %vm847_vm9 = vcmp.gt.f32.partialorder %v1669_v32, 0.5  ;;  %s1384_s27 = sshll.u32 %s1469_s18, 4  ;;  %s1385_s27 = int_to_ptr.vmem [resolvable:$false] %s1384_s27 }
  0x44   : > { %1221 = vmatpush3.msra.mxu0 %v1168_v3  ;;  %1209 = vmatprep.mubr.msk.f32.mxu0 %vm279_vm0, %v266_v4  ;;  %v1006_v39 = vadd.f32 %v1005_v34, %v1004_v35  ;;  %v1009_v40 = vsel %vm960_vm1, %v943_v36, 0.0  ;;  %v1007_v41 = vsel %vm960_vm1, %v942_v38, 0.0  ;;  %v1468_v23 = vmov 0.75   ;;  %p1382_p0 = pnand %p1381_p8, %p2088_p11  ;;  %s1386_s11 = scalar_lea.vmem %s1385_s27, 256 }
  0x45   : > { %v1729_v26 = vsel %vm511_vm4, 0.25, %v1468_v23  ;;  %v1734_v27 = vsel %vm510_vm5, 0.25, %v1468_v23  ;;  %v1740_v29 = vsel %vm513_vm6, 0.25, %v1468_v23  ;;  %v1745_v30 = vsel %vm845_vm7, 0.25, %v1468_v23  ;;  %p1387_p13 = scmp.lt.s32.totalorder %s2017_s14, %s1385_s27  ;;  %p1388_p2 = scmp.lt.s32.totalorder %s1386_s11, %s1380_s9 }
  0x46   : > { %v1008_v42 = vadd.f32 %v1007_v41, %v1006_v39  ;;  %v1751_v35 = vsel %vm844_vm8, 0.25, %v1468_v23  ;;  %v1756_v36 = vsel %vm847_vm9, 0.25, %v1468_v23  ;;  %p1383_p6 = pneg %p1382_p0 }
  0x47   : > { %1210 = vmatmul.mubr.msk.f32.gmra.mrb[2].mxu0 %vm279_vm0, %v267_v5  ;;  %p1389_p5 = por %p1388_p2, %p1387_p13 }
  0x48   : > { %1222 = vmatprep.mubr.msk.f32.mxu0 %vm279_vm0, %v264_v1  ;;  %v1010_v43 = vadd.f32 %v1009_v40, %v1008_v42 }
  0x49   : > { %p1390_p4 = pnand %p1389_p5, %p1383_p6 }
  0x4a   : > { %v1011_v44 = vrot.slane %v1010_v43, 4 }
  0x4b   : > { %1223 = vmatmul.mubr.msk.f32.vlgmr.msra.gmra.mrb[4].mxu0 %vm279_vm0, %v265_v2 }
  0x4c   : > { %1225 = vmatprep.mubr.msk.f32.mxu0 %vm279_vm0, %v266_v4  ;;  %v1012_v45 = vadd.f32 %v1011_v44, %v1010_v43 }
  0x4e   : > { %v1013_v46 = vrot.slane %v1012_v45, 2 }
  0x4f   : > { %1226 = vmatmul.mubr.msk.f32.gmra.mrb[6].mxu0 %vm279_vm0, %v267_v5 }
  0x50   : > { %v1014_v47 = vadd.f32 %v1013_v46, %v1012_v45 }
  0x52   : > { %v1015_v48 = vrot.slane %v1014_v47, 1 }
  0x54   : > { %v1016_v49 = vadd.f32 %v1015_v48, %v1014_v47 }
  0x56   : > { %1017 = vst.msk [vmem:[%s1684_s12 + $0x3] sm:$0x1] %vm974_vm2, %v1016_v49 }
 0x116   : > { %v1208_v7 = vpop.f32.mrb[0].mxu0 }
 0x117   : > { %v358_v8 = vpop.f32.mrb[1].mxu0 }
 0x118   : > { %1214 = vmatprep.mubr.msk.f32.mxu1 %vm279_vm0, %v358_v8 }
 0x119   : > { %1215 = vmatmul.mubr.msk.f32.vlgmr.msra.gmra.mrb[0].mxu1 %vm279_vm0, %v1208_v7 }
 0x11a   : > { %v1211_v9 = vpop.f32.mrb[2].mxu0  ;;  %1229 = vmatpush3.msra.mxu1 %v268_v6 }
 0x11b   : > { %v368_v10 = vpop.f32.mrb[3].mxu0 }
 0x11c   : > { %1217 = vmatprep.mubr.msk.f32.mxu1 %vm279_vm0, %v368_v10 }
 0x11d   : > { %1218 = vmatmul.mubr.msk.f32.gmra.mrb[2].mxu1 %vm279_vm0, %v1211_v9 }
 0x11e   : > { %v1224_v11 = vpop.f32.mrb[4].mxu0 }
 0x11f   : > { %v692_v12 = vpop.f32.mrb[5].mxu0 }
 0x120   : > { %1230 = vmatprep.mubr.msk.f32.mxu1 %vm279_vm0, %v692_v12 }
 0x121   : > { %1231 = vmatmul.mubr.msk.f32.vlgmr.msra.gmra.mrb[4].mxu1 %vm279_vm0, %v1224_v11 }
 0x122   : > { %v1227_v13 = vpop.f32.mrb[6].mxu0 }
 0x123   : > { %v702_v14 = vpop.f32.mrb[7].mxu0 }
 0x124   : > { %1233 = vmatprep.mubr.msk.f32.mxu1 %vm279_vm0, %v702_v14 }
 0x125   : > { %1234 = vmatmul.mubr.msk.f32.gmra.mrb[6].mxu1 %vm279_vm0, %v1227_v13 }
 0x1ec   : > { %v1689_v51 = vpop.f32.mrb[0].mxu1 }
 0x1ed   : > { %v475_v52 = vand.u32 2147483647, %v1689_v51  ;;  %v1692_v53 = vpop.f32.mrb[1].mxu1  ;;  %v515_v16 = vmax.f32 %v1689_v51, 0.0  ;;  %v519_v17 = vmul.f32 %v1689_v51, %v1655_v21  ;;  %vm499_vm10 = vcmp.ge.f32.partialorder %v1689_v51, 0.0 }
 0x1ee   : > { %v474_v54 = vand.u32 2147483647, %v1692_v53  ;;  %v514_v34 = vmax.f32 %v1692_v53, 0.0  ;;  %v518_v40 = vmul.f32 %v1692_v53, %v1657_v22  ;;  %vm498_vm11 = vcmp.ge.f32.partialorder %v1692_v53, 0.0 }
 0x1ef   : > { %v479_v55 = vsub.f32 0.0, %v475_v52  ;;  %v1760_v39 = vsub.f32 %v515_v16, %v519_v17 }
 0x1f0   : > { %v478_v56 = vsub.f32 0.0, %v474_v54  ;;  %v1695_v57 = vpop.f32.mrb[2].mxu1 }
 0x1f1   : > { %v484_v58 = vmul.f32 1.442695, %v479_v55  ;;  %v477_v59 = vand.u32 2147483647, %v1695_v57  ;;  %v1698_v61 = vpop.f32.mrb[3].mxu1  ;;  %v517_v41 = vmax.f32 %v1695_v57, 0.0  ;;  %v521_v43 = vmul.f32 %v1695_v57, %v1667_v31 }
 0x1f2   : > { %v482_v60 = vmul.f32 1.442695, %v478_v56  ;;  %v476_v63 = vand.u32 2147483647, %v1698_v61  ;;  %v1781_v55 = vsub.f32 %v514_v34, %v518_v40  ;;  %vm501_vm14 = vcmp.ge.f32.partialorder %v1695_v57, 0.0 }
 0x1f3   : > { %1302 = vpow2.f32 %v484_v58  ;;  %v481_v62 = vsub.f32 0.0, %v477_v59 }
 0x1f4   : > { %1304 = vpow2.f32 %v482_v60  ;;  %v1701_v0 = vpop.f32.mrb[4].mxu1  ;;  %v480_v3 = vsub.f32 0.0, %v476_v63 }
 0x1f5   : > { %v488_v1 = vmul.f32 1.442695, %v481_v62  ;;  %v809_v2 = vand.u32 2147483647, %v1701_v0  ;;  %v1704_v4 = vpop.f32.mrb[5].mxu1  ;;  %v849_v46 = vmax.f32 %v1701_v0, 0.0  ;;  %v853_v47 = vmul.f32 %v1701_v0, %v1659_v24 }
 0x1f6   : > { %v808_v6 = vand.u32 2147483647, %v1704_v4  ;;  %v486_v12 = vmul.f32 1.442695, %v480_v3  ;;  %v848_v49 = vmax.f32 %v1704_v4, 0.0  ;;  %v852_v50 = vmul.f32 %v1704_v4, %v1661_v25 }
 0x1f7   : > { %1306 = vpow2.f32 %v488_v1  ;;  %v813_v5 = vsub.f32 0.0, %v809_v2  ;;  %v1791_v2 = vsub.f32 %v517_v41, %v521_v43  ;;  %vm833_vm0 = vcmp.ge.f32.partialorder %v1701_v0, 0.0 }
 0x1f8   : > { %v1707_v7 = vpop.f32.mrb[6].mxu1  ;;  %v812_v9 = vsub.f32 0.0, %v808_v6 }
 0x1f9   : > { %v818_v8 = vmul.f32 1.442695, %v813_v5  ;;  %v811_v10 = vand.u32 2147483647, %v1707_v7  ;;  %v1710_v11 = vpop.f32.mrb[7].mxu1  ;;  %v851_v56 = vmax.f32 %v1707_v7, 0.0  ;;  %v855_v60 = vmul.f32 %v1707_v7, %v1669_v32 }
 0x1fa   : > { %v816_v13 = vmul.f32 1.442695, %v812_v9  ;;  %v810_v44 = vand.u32 2147483647, %v1710_v11  ;;  %v1794_v5 = vsub.f32 %v849_v46, %v853_v47 }
 0x1fb   : > { %1308 = vpow2.f32 %v818_v8  ;;  %v815_v14 = vsub.f32 0.0, %v811_v10  ;;  %v1799_v10 = vsub.f32 %v848_v49, %v852_v50 }
 0x1fc   : > { %1310 = vpow2.f32 %v816_v13  ;;  %v814_v62 = vsub.f32 0.0, %v810_v44 }
 0x1fd   : > { %v1718_v15 = vpop.eup %1302  ;;  %v822_v18 = vmul.f32 1.442695, %v815_v14  ;;  %1312 = vpow2.f32 %v486_v12 }
 0x1fe   : > { %v1723_v19 = vpop.eup %1304  ;;  %v491_v20 = vadd.f32 1.0, %v1718_v15  ;;  %v538_v45 = vmul.f32 -0.5, %v1718_v15  ;;  %v541_v54 = vand.u32 2147483647, %v1718_v15  ;;  %v1817_v34 = vmul.f32 1.442695, %v814_v62 }
 0x1ff   : > { %v490_v28 = vadd.f32 1.0, %v1723_v19  ;;  %1314 = vpow2.f32 %v822_v18  ;;  %v529_v48 = vmul.f32 -0.5, %v1723_v19  ;;  %v532_v58 = vand.u32 2147483647, %v1723_v19 }
 0x200   : > { %1316 = vrcp.f32 %v491_v20  ;;  %v539_v1 = vadd.f32 1.0, %v538_v45  ;;  %vm1803_vm12 = vcmp.lt.f32.partialorder %v541_v54, 0.0004427343 }
 0x201   : > { %v1758_v38 = vpop.eup %1306  ;;  %1318 = vlog2.f32 %v491_v20  ;;  %v530_v8 = vadd.f32 1.0, %v529_v48  ;;  %vm1809_vm13 = vcmp.lt.f32.partialorder %v532_v58, 0.0004427343 }
 0x202   : > { %1320 = vrcp.f32 %v490_v28  ;;  %v493_v42 = vadd.f32 1.0, %v1758_v38  ;;  %v556_v3 = vmul.f32 -0.5, %v1758_v38  ;;  %v559_v9 = vand.u32 2147483647, %v1758_v38 }
 0x203   : > { %1322 = vlog2.f32 %v490_v28  ;;  %v1815_v28 = vsub.f32 %v851_v56, %v855_v60  ;;  %v531_v47 = vmul.f32 %v1723_v19, %v530_v8 }
 0x204   : > { %1324 = vrcp.f32 %v493_v42  ;;  %v557_v43 = vadd.f32 1.0, %v556_v3  ;;  %vm1824_vm15 = vcmp.lt.f32.partialorder %v559_v9, 0.0004427343 }
 0x205   : > { %v1778_v52 = vpop.eup %1308  ;;  %1326 = vlog2.f32 %v493_v42  ;;  %v540_v42 = vmul.f32 %v1718_v15, %v539_v1 }
 0x206   : > { %v825_v59 = vadd.f32 1.0, %v1778_v52  ;;  %v1789_v63 = vpop.eup %1310  ;;  %v872_v14 = vmul.f32 -0.5, %v1778_v52  ;;  %v875_v49 = vand.u32 2147483647, %v1778_v52 }
 0x207   : > { %v1796_v6 = vpop.eup %1312  ;;  %v824_v16 = vadd.f32 1.0, %v1789_v63  ;;  %v863_v20 = vmul.f32 -0.5, %v1789_v63 }
 0x208   : > { %1328 = vrcp.f32 %v825_v59  ;;  %v1821_v44 = vadd.f32 1.0, %v1796_v6  ;;  %v873_v56 = vadd.f32 1.0, %v872_v14  ;;  %v558_v14 = vmul.f32 %v1758_v38, %v557_v43 }
 0x209   : > { %v1801_v12 = vpop.eup %1314  ;;  %1330 = vlog2.f32 %v825_v59  ;;  %v864_v19 = vadd.f32 1.0, %v863_v20  ;;  %vm1852_vm3 = vcmp.lt.f32.partialorder %v875_v49, 0.0004427343 }
 0x20a   : > { %v1317_v17 = vpop.eup %1316  ;;  %1332 = vrcp.f32 %v824_v16  ;;  %v827_v60 = vadd.f32 1.0, %v1801_v12  ;;  %v890_v53 = vmul.f32 -0.5, %v1801_v12 }
 0x20b   : > { %v1319_v40 = vpop.eup %1318  ;;  %v503_v41 = vsub.f32 1.0, %v1317_v17  ;;  %1334 = vlog2.f32 %v824_v16  ;;  %v865_v38 = vmul.f32 %v1789_v63, %v864_v19 }
 0x20c   : > { %v1321_v45 = vpop.eup %1320  ;;  %v537_v46 = vmul.f32 0.6931472, %v1319_v40  ;;  %1336 = vlog2.f32 %v1821_v44  ;;  %v891_v49 = vadd.f32 1.0, %v890_v53 }
 0x20d   : > { %v1323_v50 = vpop.eup %1322  ;;  %v1831_v54 = vsel %vm499_vm10, %v1317_v17, %v503_v41  ;;  %v502_v15 = vsub.f32 1.0, %v1321_v45  ;;  %v874_v41 = vmul.f32 %v1778_v52, %v873_v56  ;;  %vm832_vm10 = vcmp.ge.f32.partialorder %v1704_v4, 0.0 }
 0x20e   : > { %v1325_v58 = vpop.eup %1324  ;;  %v543_v59 = vsel %vm1803_vm12, %v540_v42, %v537_v46  ;;  %v528_v3 = vmul.f32 0.6931472, %v1323_v50  ;;  %v567_v9 = vsub.f32 1.0, %v1831_v54  ;;  %1338 = vrcp.f32 %v827_v60 }
 0x20f   : > { %v1327_v62 = vpop.eup %1326  ;;  %v563_v1 = vadd.f32 %v543_v59, %v1760_v39  ;;  %v1840_v51 = vsel %vm498_vm11, %v1321_v45, %v502_v15  ;;  %v505_v8 = vsub.f32 1.0, %v1325_v58  ;;  %v866_v39 = vand.u32 2147483647, %v1789_v63 }
 0x210   : > { %v566_v13 = vsub.f32 1.0, %v1840_v51  ;;  %v534_v16 = vsel %vm1809_vm13, %v531_v47, %v528_v3  ;;  %v555_v17 = vmul.f32 0.6931472, %v1327_v62  ;;  %v571_v52 = vsel %vm511_vm4, %v567_v9, %v1831_v54 }
 0x211   : > { %v562_v40 = vadd.f32 %v534_v16, %v1781_v55  ;;  %v579_v18 = vmul.f32 %v1729_v26, %v563_v1  ;;  %v1860_v45 = vsel %vm501_vm14, %v1325_v58, %v505_v8  ;;  %1340 = vlog2.f32 %v827_v60 }
 0x212   : > { %v1329_v20 = vpop.eup %1328  ;;  %v561_v46 = vsel %vm1824_vm15, %v558_v14, %v555_v17  ;;  %v570_v55 = vsel %vm510_vm5, %v566_v13, %v1840_v51  ;;  %vm1873_vm11 = vcmp.lt.f32.partialorder %v866_v39, 0.0004427343  ;;  %v599_v50 = vmul.f32 %v1831_v54, %v1655_v21 }
 0x213   : > { %v1331_v43 = vpop.eup %1330  ;;  %v578_v26 = vmul.f32 %v1734_v27, %v562_v40  ;;  %v565_v57 = vadd.f32 %v561_v46, %v1791_v2  ;;  %v837_v63 = vsub.f32 1.0, %v1329_v20  ;;  %v611_v15 = vsub.f32 %v1831_v54, %v1655_v21 }
 0x214   : > { %v871_v47 = vmul.f32 0.6931472, %v1331_v43  ;;  %v569_v56 = vsub.f32 1.0, %v1860_v45  ;;  %v893_v27 = vand.u32 2147483647, %v1801_v12  ;;  %v1333_v58 = vpop.eup %1332  ;;  %v583_v59 = vmul.f32 %v579_v18, %v571_v52 }
 0x215   : > { %v582_v2 = vmul.f32 %v578_v26, %v570_v55  ;;  %v598_v19 = vmul.f32 %v1840_v51, %v1657_v22  ;;  %v841_v60 = vsel %vm833_vm0, %v1329_v20, %v837_v63  ;;  %v1335_v62 = vpop.eup %1334  ;;  %v610_v1 = vsub.f32 %v1840_v51, %v1657_v22 }
 0x216   : > { %v601_v21 = vmul.f32 %v1860_v45, %v1667_v31  ;;  %v613_v3 = vsub.f32 %v1860_v45, %v1667_v31  ;;  %v877_v8 = vsel %vm1852_vm3, %v874_v41, %v871_v47  ;;  %v581_v9 = vmul.f32 %v1740_v29, %v565_v57  ;;  %v1899_v16 = vpop.eup %1336 }
 0x217   : > { %v897_v13 = vadd.f32 %v877_v8, %v1794_v5  ;;  %v901_v14 = vsub.f32 1.0, %v841_v60  ;;  %v929_v0 = vadd.f32 %v841_v60, %v1831_v54  ;;  %vm835_vm4 = vcmp.ge.f32.partialorder %v1707_v7, 0.0 }
 0x218   : > { %v1904_v22 = vsel %vm513_vm6, %v569_v56, %v1860_v45  ;;  %v933_v17 = vmul.f32 %v841_v60, %v1659_v24  ;;  %v945_v39 = vsub.f32 %v841_v60, %v1659_v24  ;;  %v836_v53 = vsub.f32 1.0, %v1333_v58  ;;  %v1339_v43 = vpop.eup %1338 }
 0x219   : > { %v587_v29 = vmul.f32 %v583_v59, %v571_v52  ;;  %v586_v20 = vmul.f32 %v582_v2, %v570_v55  ;;  %v905_v5 = vsel %vm845_vm7, %v901_v14, %v841_v60  ;;  %v913_v54 = vmul.f32 %v1745_v30, %v897_v13 }
 0x21a   : > { %v937_v40 = vadd.f32 %v933_v17, %v599_v50  ;;  %v949_v41 = vsub.f32 %v945_v39, %v611_v15  ;;  %v840_v42 = vsel %vm832_vm10, %v1333_v58, %v836_v53  ;;  %v862_v31 = vmul.f32 0.6931472, %v1335_v62 }
 0x21b   : > { %v585_v18 = vmul.f32 %v581_v9, %v1904_v22  ;;  %v917_v46 = vmul.f32 %v913_v54, %v905_v5  ;;  %v900_v26 = vsub.f32 1.0, %v840_v42  ;;  %v928_v57 = vadd.f32 %v840_v42, %v1840_v51  ;;  %v1341_v52 = vpop.eup %1340 }
 0x21c   : > { %v953_v55 = vand.u32 2147483647, %v949_v41  ;;  %v977_v24 = vsel %vm960_vm1, %v929_v0, 0.0  ;;  %v868_v30 = vsel %vm1873_vm11, %v865_v38, %v862_v31  ;;  %v932_v63 = vmul.f32 %v840_v42, %v1661_v25 }
 0x21d   : > { %v921_v47 = vmul.f32 %v917_v46, %v905_v5  ;;  %v991_v4 = vsel %vm960_vm1, %v937_v40, 0.0  ;;  %v896_v50 = vadd.f32 %v868_v30, %v1799_v10  ;;  %v944_v15 = vsub.f32 %v840_v42, %v1661_v25 }
 0x21e   : > { %v1019_v56 = vsel %vm960_vm1, %v953_v55, 0.0  ;;  %v904_v51 = vsel %vm844_vm8, %v900_v26, %v840_v42  ;;  %v936_v58 = vadd.f32 %v932_v63, %v598_v19  ;;  %v839_v59 = vsub.f32 1.0, %v1339_v43 }
 0x21f   : > { %v925_v2 = vadd.f32 %v921_v47, %v587_v29  ;;  %v912_v48 = vmul.f32 %v1751_v35, %v896_v50  ;;  %v948_v38 = vsub.f32 %v944_v15, %v610_v1  ;;  %v889_v60 = vmul.f32 0.6931472, %v1341_v52 }
 0x220   : > { %v976_v62 = vsel %vm960_vm1, %v928_v57, 0.0  ;;  %v990_v8 = vsel %vm960_vm1, %v936_v58, 0.0  ;;  %v843_v10 = vsel %vm835_vm4, %v1339_v43, %v839_v59  ;;  %v892_v9 = vmul.f32 %v1801_v12, %v891_v49 }
 0x221   : > { %v916_v13 = vmul.f32 %v912_v48, %v904_v51  ;;  %v952_v14 = vand.u32 2147483647, %v948_v38  ;;  %vm894_vm5 = vcmp.lt.f32.partialorder %v893_v27, 0.0004427343  ;;  %v903_v25 = vsub.f32 1.0, %v843_v10 }
 0x222   : > { %v895_v19 = vsel %vm894_vm5, %v892_v9, %v889_v60  ;;  %v1932_v0 = vadd.f32 %v843_v10, %v1860_v45  ;;  %v935_v35 = vmul.f32 %v843_v10, %v1669_v32  ;;  %v947_v1 = vsub.f32 %v843_v10, %v1669_v32 }
 0x223   : > { %v962_v17 = vsel %vm960_vm1, %v925_v2, 0.0  ;;  %v920_v39 = vmul.f32 %v916_v13, %v904_v51  ;;  %v1018_v7 = vsel %vm960_vm1, %v952_v14, 0.0  ;;  %v899_v53 = vadd.f32 %v895_v19, %v1815_v28 }
 0x224   : > { %v907_v12 = vsel %vm847_vm9, %v903_v25, %v843_v10  ;;  %v1941_v49 = vadd.f32 %v935_v35, %v601_v21  ;;  %v1943_v27 = vsub.f32 %v947_v1, %v613_v3  ;;  %1342 = vpow2.f32 %v1817_v34 }
 0x225   : > { %v924_v45 = vadd.f32 %v920_v39, %v586_v20  ;;  %v915_v29 = vmul.f32 %v1756_v36, %v899_v53  ;;  %v1947_v5 = vadd.f32 %v977_v24, %v976_v62  ;;  %v1949_v54 = vadd.f32 %v991_v4, %v990_v8 }
 0x226   : > { %1344 = vrcp.f32 %v1821_v44  ;;  %v1952_v40 = vadd.f32 %v1019_v56, %v1018_v7  ;;  %v589_v3 = vmul.f32 %v585_v18, %v1904_v22  ;;  %v547_v36 = vmul.f32 -0.5, %v1796_v6 }
 0x227   : > { %v961_v32 = vsel %vm960_vm1, %v924_v45, 0.0  ;;  %v919_v28 = vmul.f32 %v915_v29, %v907_v12  ;;  %v550_v44 = vand.u32 2147483647, %v1796_v6  ;;  %v546_v46 = vmul.f32 0.6931472, %v1899_v16 }
 0x228   : > { %v1955_v21 = vadd.f32 %v962_v17, %v961_v32  ;;  %v548_v43 = vadd.f32 1.0, %v547_v36  ;;  %v516_v57 = vmax.f32 %v1698_v61, 0.0  ;;  %v520_v22 = vmul.f32 %v1698_v61, %v1671_v33 }
 0x229   : > { %v923_v41 = vmul.f32 %v919_v28, %v907_v12  ;;  %vm551_vm6 = vcmp.lt.f32.partialorder %v550_v44, 0.0004427343  ;;  %vm500_vm7 = vcmp.ge.f32.partialorder %v1698_v61, 0.0  ;;  %vm512_vm8 = vcmp.gt.f32.partialorder %v1671_v33, 0.5 }
 0x22a   : > { %v549_v18 = vmul.f32 %v1796_v6, %v548_v43  ;;  %v524_v30 = vsub.f32 %v516_v57, %v520_v22  ;;  %vm846_vm9 = vcmp.gt.f32.partialorder %v1677_v37, 0.5  ;;  %v850_v63 = vmax.f32 %v1710_v11, 0.0 }
 0x22b   : > { %v1958_v34 = vadd.f32 %v923_v41, %v589_v3  ;;  %v854_v47 = vmul.f32 %v1710_v11, %v1677_v37  ;;  %v576_v6 = vsel %vm512_vm8, 0.25, %v1468_v23  ;;  %vm834_vm12 = vcmp.ge.f32.partialorder %v1710_v11, 0.0 }
 0x22c   : > { %v552_v55 = vsel %vm551_vm6, %v549_v18, %v546_v46  ;;  %v910_v58 = vsel %vm846_vm9, 0.25, %v1468_v23  ;;  %v955_v12 = vand.u32 2147483647, %v1943_v27  ;;  %v981_v45 = vsel %vm960_vm1, %v1932_v0, 0.0 }
 0x22d   : > { %v564_v16 = vadd.f32 %v552_v55, %v524_v30  ;;  %v858_v2 = vsub.f32 %v850_v63, %v854_v47  ;;  %v995_v41 = vsel %vm960_vm1, %v1941_v49, 0.0  ;;  %v966_v18 = vsel %vm960_vm1, %v1958_v34, 0.0 }
 0x22e   : > { %v1343_v20 = vpop.eup %1342  ;;  %v1023_v0 = vsel %vm960_vm1, %v955_v12, 0.0 }
 0x22f   : > { %v826_v42 = vadd.f32 1.0, %v1343_v20  ;;  %v881_v52 = vmul.f32 -0.5, %v1343_v20  ;;  %v884_v61 = vand.u32 2147483647, %v1343_v20  ;;  %v580_v59 = vmul.f32 %v576_v6, %v564_v16 }
 0x230   : > { %v1345_v31 = vpop.eup %1344 }
 0x231   : > { %1346 = vrcp.f32 %v826_v42  ;;  %v504_v26 = vsub.f32 1.0, %v1345_v31  ;;  %v882_v4 = vadd.f32 1.0, %v881_v52  ;;  %vm885_vm13 = vcmp.lt.f32.partialorder %v884_v61, 0.0004427343 }
 0x232   : > { %1348 = vlog2.f32 %v826_v42 }
 0x233   : > { %v508_v24 = vsel %vm500_vm7, %v1345_v31, %v504_v26  ;;  %v883_v38 = vmul.f32 %v1343_v20, %v882_v4 }
 0x234   : > { %v568_v50 = vsub.f32 1.0, %v508_v24  ;;  %v600_v62 = vmul.f32 %v508_v24, %v1671_v33  ;;  %v612_v14 = vsub.f32 %v508_v24, %v1671_v33 }
 0x236   : > { %v572_v60 = vsel %vm512_vm8, %v568_v50, %v508_v24 }
 0x237   : > { %v584_v19 = vmul.f32 %v580_v59, %v572_v60 }
 0x239   : > { %v588_v3 = vmul.f32 %v584_v19, %v572_v60 }
 0x23b   : > { %v1347_v15 = vpop.eup %1346 }
 0x23c   : > { %v1349_v56 = vpop.eup %1348  ;;  %v838_v51 = vsub.f32 1.0, %v1347_v15 }
 0x23d   : > { %v880_v48 = vmul.f32 0.6931472, %v1349_v56 }
 0x23e   : > { %v842_v8 = vsel %vm834_vm12, %v1347_v15, %v838_v51 }
 0x23f   : > { %v886_v10 = vsel %vm885_vm13, %v883_v38, %v880_v48  ;;  %v902_v9 = vsub.f32 1.0, %v842_v8  ;;  %v930_v13 = vadd.f32 %v842_v8, %v508_v24  ;;  %v934_v11 = vmul.f32 %v842_v8, %v1677_v37 }
 0x240   : > { %v898_v25 = vadd.f32 %v886_v10, %v858_v2  ;;  %v946_v23 = vsub.f32 %v842_v8, %v1677_v37 }
 0x241   : > { %v906_v35 = vsel %vm846_vm9, %v902_v9, %v842_v8  ;;  %v938_v1 = vadd.f32 %v934_v11, %v600_v62  ;;  %v979_v17 = vsel %vm960_vm1, %v930_v13, 0.0 }
 0x242   : > { %v914_v39 = vmul.f32 %v910_v58, %v898_v25  ;;  %v950_v7 = vsub.f32 %v946_v23, %v612_v14  ;;  %v980_v53 = vadd.f32 %v979_v17, %v1947_v5 }
 0x243   : > { %v993_v33 = vsel %vm960_vm1, %v938_v1, 0.0 }
 0x244   : > { %v918_v29 = vmul.f32 %v914_v39, %v906_v35  ;;  %v954_v32 = vand.u32 2147483647, %v950_v7  ;;  %v982_v28 = vadd.f32 %v981_v45, %v980_v53  ;;  %v994_v37 = vadd.f32 %v993_v33, %v1949_v54 }
 0x246   : > { %v922_v36 = vmul.f32 %v918_v29, %v906_v35  ;;  %v983_v20 = vrot.slane %v982_v28, 4  ;;  %v996_v42 = vadd.f32 %v995_v41, %v994_v37  ;;  %v1021_v5 = vsel %vm960_vm1, %v954_v32, 0.0 }
 0x247   : > { %v1022_v27 = vadd.f32 %v1021_v5, %v1952_v40 }
 0x248   : > { %v926_v31 = vadd.f32 %v922_v36, %v588_v3  ;;  %v984_v43 = vadd.f32 %v983_v20, %v982_v28  ;;  %v997_v44 = vrot.slane %v996_v42, 4 }
 0x249   : > { %v1024_v46 = vadd.f32 %v1023_v0, %v1022_v27 }
 0x24a   : > { %v964_v26 = vsel %vm960_vm1, %v926_v31, 0.0  ;;  %v985_v54 = vrot.slane %v984_v43, 2  ;;  %v998_v57 = vadd.f32 %v997_v44, %v996_v42 }
 0x24b   : > { %v965_v22 = vadd.f32 %v964_v26, %v1955_v21  ;;  %v1025_v49 = vrot.slane %v1024_v46, 4 }
 0x24c   : > { %v986_v52 = vadd.f32 %v985_v54, %v984_v43  ;;  %v999_v40 = vrot.slane %v998_v57, 2 }
 0x24d   : > { %v967_v55 = vadd.f32 %v966_v18, %v965_v22  ;;  %v1026_v24 = vadd.f32 %v1025_v49, %v1024_v46 }
 0x24e   : > { %v987_v30 = vrot.slane %v986_v52, 1  ;;  %v1000_v16 = vadd.f32 %v999_v40, %v998_v57 }
 0x24f   : > { %v968_v63 = vrot.slane %v967_v55, 4  ;;  %v1027_v47 = vrot.slane %v1026_v24, 2 }
 0x250   : > { %v988_v4 = vadd.f32 %v987_v30, %v986_v52  ;;  %v1001_v50 = vrot.slane %v1000_v16, 1 }
 0x251   : > { %v969_v21 = vadd.f32 %v968_v63, %v967_v55  ;;  %v1028_v6 = vadd.f32 %v1027_v47, %v1026_v24 }
 0x252   : > { %v1002_v61 = vadd.f32 %v1001_v50, %v1000_v16  ;;  %989 = vst.msk [vmem:[%s1684_s12 + $0x1] sm:$0x1] %vm974_vm2, %v988_v4 }
 0x253   : > { %v970_v34 = vrot.slane %v969_v21, 2  ;;  %v1029_v15 = vrot.slane %v1028_v6, 1 }
 0x254   : > { %1003 = vst.msk [vmem:[%s1684_s12 + $0x2] sm:$0x1] %vm974_vm2, %v1002_v61 }
 0x255   : > { %v971_v56 = vadd.f32 %v970_v34, %v969_v21  ;;  %v1030_v51 = vadd.f32 %v1029_v15, %v1028_v6 }
 0x257   : > { %v972_v58 = vrot.slane %v971_v56, 1  ;;  %1031 = vst.msk [vmem:[%s1684_s12 + $0x4] sm:$0x1] %vm974_vm2, %v1030_v51 }
 0x259   : > { %v973_v59 = vadd.f32 %v972_v58, %v971_v56 }
 0x25b   : > { %975 = vst.msk [vmem:[%s1684_s12] sm:$0x1] %vm974_vm2, %v973_v59 }
 0x25c   : > { %1393 = shalt.err (!%p1390_p4)
}
 0x25d   : > { %s1394_s22 = scalar_lea.hbm %s2015_s7, 128  ;;  %s1398_s25 = scalar_lea.hbm %s2070_s4, 256 }
 0x25e   : > { %p1395_p7 = scmp.ne.s32.totalorder %s2015_s7, %s1394_s22  ;;  %p1399_p1 = scmp.lt.u32.totalorder %s2015_s7, %s2070_s4 }
 0x25f   : > { %p1400_p3 = scmp.lt.u32.totalorder %s1398_s25, %s1394_s22  ;;  %p1402_p8 = scmp.lt.u32.totalorder %s1394_s22, %s2015_s7 }
 0x260   : > { %p1396_p10 = pnand %p1395_p7, %p2088_p11 }
 0x261   : > { %p1401_p9 = por %p1400_p3, %p1399_p1 }
 0x262   : > { %p1397_p12 = pneg %p1396_p10 }
 0x263   : > { %p1403_p0 = por %p1402_p8, %p1401_p9 }
 0x265   : > { %p1404_p6 = pnand %p1403_p0, %p1397_p12 }
 0x267   : > { %1407 = shalt.err (!%p1404_p6)
}
 0x268   : > { %1238 = dma.vmem_to_hbm [thread:$0]  (%p2088_p11), %s2017_s14, 128, %s2015_s7, %s1035_s8  }
 0x269 PF: > { %s1061_s12 = sand.u32 1, %s1442_s15   ;;  %p2089_p13 = scmp.ne.s32.totalorder %s2075_s30, 0 }
 0x26a   : > { %p2090_p2 = scmp.ge.s32.totalorder %s1462_s20, 2  ;;  %s1062_s13 = scalar_lea.sflag [#allocation4], %s1061_s12 }
 0x26c   : > { %p1245_p5 = pnand %p2090_p2, %p2089_p13 }
 0x26e   : > { %1437 = dma.done.wait (!%p1245_p5), %s1062_s13, 128  }
 0x26f   : > { %1439 = vsyncadd (!%p1245_p5), %s1062_s13, 4294967168  ;;  %s20_s20 = sadd.s32 1, %s1462_s20   ;;  %s2091_s15 = smov %s1446_s16 }
 0x270   : > { %p17_p4 = scmp.ge.s32.totalorder %s20_s20, 4   ;;  %s2092_s16 = smov %s1450_s17 }
 0x271   : > { %s2093_s17 = smov %s1551_s29  ;;  %s2094_s18 = smov %s1458_s19 }
 0x272   : > { %s2095_s19 = smov %s2097_s23  ;;  %19 = sbr.rel (!%p17_p4) target bundleno = 6 (0x6), region = 86 }
 0x279   :  { %1067 = vsyncpa [#allocation3], 1 }
 0x27a   :  { %1069 = vsyncpa [#allocation3 + $0x1], 1 }
 0x27b   :  { %1070 = vsyncpa [#allocation4], 1 }
 0x27c   :  { %1072 = vsyncpa [#allocation4 + $0x1], 1 }

// kernel: tpu_custom_call.1
= control target key start
LH: loop header
LB: loop body
LE: loop exit
PB: predicated region body
PF: predicated region fallthrough
CT: control target
= control target key end

     0   :  { %9 = vsyncpa [#allocation3], 0  ;;  %s2066_s0 = inlined_call_operand.vmem [shape: f32[32,8], index: 0, kind: input, shape index: {}]   ;;  %s2067_s1 = inlined_call_operand.vmem [shape: f32[8,32], index: 1, kind: input, shape index: {}]   ;;  %s2068_s2 = inlined_call_operand.vmem [shape: f32[2,2,8,8], index: 2, kind: input, shape index: {}]   ;;  %s2069_s3 = inlined_call_operand.hbm [shape: s8[2,2,32,32], index: 3, kind: input, shape index: {}]   ;;  %s2070_s4 = inlined_call_operand.hbm [shape: f32[2,1,8,32], index: 4, kind: output, shape index: {}]  }
   0x1   :  { %11 = vsyncpa [#allocation3 + $0x1], 0 }
   0x2   :  { %12 = vsyncpa [#allocation4], 0 }
   0x3   :  { %14 = vsyncpa [#allocation4 + $0x1], 0  ;;  %s1495_s15 = smov 0   ;;  %s1497_s16 = smov 0  }
   0x4   :  { %s1499_s17 = smov 0   ;;  %s1501_s18 = smov 0  }
   0x5   :  { %s1503_s19 = smov 0   ;;  %s1505_s20 = smov 0  }
   0x6 LB: > { %s1148_s21 = sadd.s32 4294967295, %s1462_s20   ;;  %s1149_s22 = sadd.s32 4294967294, %s1462_s20   ;;  %s1462_s20 = sphi %s1505_s20, %s20_s20   ;;  %s1458_s19 = sphi %s1503_s19, %s2095_s19   ;;  %s1454_s18 = sphi %s1501_s18, %s2094_s18   ;;  %s1450_s17 = sphi %s1499_s17, %s2093_s17   ;;  %s1446_s16 = sphi %s1497_s16, %s2092_s16   ;;  %s1442_s15 = sphi %s1495_s15, %s2091_s15  }
   0x7   : > { %s32_s23 = sadd.s32 1, %s1458_s19  ;;  %s111_s24 = sadd.s32 1, %s1450_s17 }
   0x8   : > { %p34_p0 = scmp.ge.s32.totalorder %s32_s23, 2  ;;  %p118_p1 = scmp.ne.s32.totalorder %s1450_s17, %s1446_s16 }
   0x9   : > { %p119_p2 = scmp.eq.s32.totalorder %s1462_s20, 0  ;;  %p124_p3 = scmp.ne.s32.totalorder %s1446_s16, %s1442_s15 }
   0xa   : > { %s2097_s23 = smov (%p34_p0, %s32_s23), 0  ;;  %p125_p5 = scmp.eq.s32.totalorder %s1148_s21, 0 }
   0xb   : > { %p1536_p4 = por %p119_p2, %p118_p1  ;;  %s106_s26 = ssub.s32 %s1458_s19, %s2097_s23 }
   0xc   : > { %p150_p6 = scmp.eq.s32.totalorder %s1148_s21, 1  ;;  %p109_p7 = scmp.eq.s32.totalorder %s106_s26, 0 }
   0xd   : > { %p1542_p8 = por %p125_p5, %p124_p3  ;;  %p156_p10 = scmp.eq.s32.totalorder %s1149_s22, 1 }
   0xe   : > { %p1546_p9 = por %p150_p6, %p118_p1  ;;  %p1248_p13 = scmp.lt.s32.totalorder %s1462_s20, 2 }
   0xf   : > { %s1551_s29 = scalar_select %p109_p7, %s1450_s17, %s111_s24  }
  0x10   : > { %s2074_s28 = scalar_select %p1546_p9, 1, 0 }
  0x11   : > { %p1553_p11 = por %p156_p10, %p124_p3  ;;  %s193_s5 = sand.u32 1, %s1450_s17  }
  0x12   : > { %s1152_s6 = sshll.u32 %s193_s5, 4  ;;  %s1182_s7 = sshll.u32 %s1458_s19, 8 }
  0x13   : > { %s2075_s30 = scalar_select %p1553_p11, 1, 0 }
  0x14   : > { %s1564_s10 = scalar_lea.hbm %s2069_s3, %s1182_s7  ;;  %s197_s11 = scalar_lea.vmem [#allocation2], %s1152_s6 }
  0x15   : > { %s205_s12 = sshll.u32 %s197_s11, 4  ;;  %p1570_p0 = pnand %p1248_p13, %p1536_p4  ;;  %s1566_s12 = int_to_ptr.vmem [resolvable:$true] %s205_s12 }
  0x16   : > { %s1575_s14 = scalar_lea.sflag [#allocation3], %s193_s5  ;;  %s1350_s21 = scalar_lea.hbm %s1564_s10, 256 }
  0x17   : > { %p1351_p2 = scmp.ne.s32.totalorder %s1564_s10, %s1350_s21  ;;  %p1352_p3 = pneg %p1570_p0 }
  0x18   : > { %s1355_s25 = scalar_lea.hbm %s2069_s3, 512  ;;  %p1356_p4 = scmp.lt.u32.totalorder %s1564_s10, %s2069_s3 }
  0x19   : > { %p1353_p5 = pnand %p1352_p3, %p1351_p2  ;;  %p1357_p7 = scmp.lt.u32.totalorder %s1355_s25, %s1350_s21 }
  0x1a   : > { %p1359_p13 = scmp.lt.u32.totalorder %s1350_s21, %s1564_s10 }
  0x1b   : > { %p1354_p6 = pneg %p1353_p5  ;;  %p1358_p10 = por %p1357_p7, %p1356_p4 }
  0x1d   : > { %p1360_p12 = por %p1359_p13, %p1358_p10 }
  0x1f   : > { %p1361_p1 = pnand %p1360_p12, %p1354_p6 }
  0x21   : > { %1364 = shalt.err (!%p1361_p1)
}
  0x22   : > { %s1365_s5 = scalar_lea.vmem %s1566_s12, 256  ;;  %s1464_s7 = smov [#allocation2]  }
  0x23   : > { %p1366_p2 = scmp.ne.s32.totalorder %s1566_s12, %s1365_s5  ;;  %s1370_s8 = sshll.u32 %s1464_s7, 4  ;;  %s1371_s8 = int_to_ptr.vmem [resolvable:$false] %s1370_s8 }
  0x24   : > { %s1372_s9 = scalar_lea.vmem %s1371_s8, 512  ;;  %p1373_p9 = scmp.lt.s32.totalorder %s1566_s12, %s1371_s8 }
  0x25   : > { %p1368_p5 = pnand %p1366_p2, %p1352_p3  ;;  %p1374_p4 = scmp.lt.s32.totalorder %s1372_s9, %s1365_s5 }
  0x27   : > { %p1369_p11 = pneg %p1368_p5  ;;  %p1375_p7 = por %p1374_p4, %p1373_p9 }
  0x29   : > { %p1376_p10 = pnand %p1375_p7, %p1369_p11 }
  0x2b   : > { %1379 = shalt.err (!%p1376_p10)
}
  0x2c   : > { %s1465_s11 = smov 128   ;;  %s1466_s21 = smov 8  }
  0x2d   : > { %1243 = dma.hbm_to_vmem [thread:$0]  (!%p1570_p0), %s1564_s10, 256, %s1566_s12, %s1575_s14, %s1465_s11, %s1465_s11, %s1466_s21  }
  0x2e   : > { %p213_p12 = scmp.lt.s32.totalorder %s1462_s20, 3  ;;  %p2077_p1 = scmp.ge.s32.totalorder %s1462_s20, 1 }
  0x30   : > { %p214_p3 = pnand %p2077_p1, %p213_p12 }
  0x31   : > { %s1607_s22 = sand.u32 (!%p214_p3), 1, %s1446_s16  }
  0x32   : > { %217 = sbr.rel (%p214_p3) target bundleno = 617 (0x269), region = 36  ;;  %s1156_s24 = sshll.u32 (!%p214_p3), %s1607_s22, 4 }
  0x33   : > { %s220_s25 = scalar_lea.sflag (!%p214_p3), [#allocation3], %s1607_s22  ;;  %s1611_s26 = scalar_lea.vmem (!%p214_p3), [#allocation2], %s1156_s24 }
  0x39   : > { %1433 = dma.done.wait (%p1542_p8), %s220_s25, 256  }
  0x3a   : > { %1435 = vsyncadd (%p1542_p8), %s220_s25, 4294967040  ;;  %p256_p9 = scmp.lt.s32.totalorder %s1454_s18, 1  ;;  %vm279_vm0 = vcmask 64512   ;;  %v264_v1 = vld [vmem:[%s2066_s0] sm:$0xff]  ;;  %v265_v2 = vld [vmem:[%s2066_s0 + $0x8] sm:$0xff]  ;;  %vm960_vm1 = vcmask 261120  }
  0x3b   : > { %1206 = vmatprep.mubr.msk.f32.mxu0 %vm279_vm0, %v264_v1  ;;  %v266_v4 = vld [vmem:[%s2066_s0 + $0x10] sm:$0xff]  ;;  %v267_v5 = vld [vmem:[%s2066_s0 + $0x18] sm:$0xff]  ;;  %v268_v6 = vld [vmem:[%s2067_s1] sm:$0xff]  ;;  %vm974_vm2 = vcmask 253952   ;;  %vm1032_vm3 = vcmask 256000   ;;  %v1467_v50 = vmov 0.0  }
  0x3c   : > { %s257_s10 = scalar_select %p256_p9, %s1454_s18, 1  ;;  %1212 = vmatprep.subr.mxu1 %v268_v6  ;;  %v270_v15 = vld [vmem:[%s1611_s26] sm:$0xff]  ;;  %v1169_v16 = vld [vmem:[%s1611_s26 + $0x8] sm:$0xff] }
  0x3d   : > { %1213 = vmatpush3.msra.mxu1 %v268_v6  ;;  %v272_v17 = vunpack.c.1.s8 %v270_v15  ;;  %v271_v18 = vunpack.c.0.s8 %v270_v15  ;;  %v619_v19 = vunpack.c.1.s8 %v1169_v16  ;;  %v618_v20 = vunpack.c.0.s8 %v1169_v16  ;;  %s1157_s26 = sshll.u32 %s1607_s22, 3  ;;  %s1179_s13 = sshll.u32 %s1454_s18, 7 }
  0x3e   : > { %s1183_s12 = sshll.u32 %s257_s10, 4  ;;  %1228 = vmatprep.subr.mxu1 %v268_v6  ;;  %v274_v23 = vunpack.c.3.s8 %v270_v15  ;;  %v621_v26 = vunpack.c.3.s8 %v1169_v16  ;;  %v273_v27 = vunpack.c.2.s8 %v270_v15  ;;  %v620_v30 = vunpack.c.2.s8 %v1169_v16  ;;  %s2015_s7 = scalar_lea.hbm %s2070_s4, %s1179_s13 }
  0x3f   : > { %s263_s6 = scalar_lea.vmem %s2068_s2, %s1183_s12  ;;  %v1655_v21 = vcvt.s32.f32 %v272_v17  ;;  %v1657_v22 = vcvt.s32.f32 %v271_v18  ;;  %v1659_v24 = vcvt.s32.f32 %v619_v19  ;;  %v1661_v25 = vcvt.s32.f32 %v618_v20  ;;  %s1684_s12 = scalar_lea.vmem [#allocation5], %s1157_s26 }
  0x40   : > { %v269_v0 = vld [vmem:[%s263_s6] sm:$0xff]  ;;  %v1168_v3 = vld [vmem:[%s263_s6 + $0x8] sm:$0xff]  ;;  %v1667_v31 = vcvt.s32.f32 %v274_v23  ;;  %v1669_v32 = vcvt.s32.f32 %v621_v26  ;;  %v1671_v33 = vcvt.s32.f32 %v273_v27  ;;  %v1677_v37 = vcvt.s32.f32 %v620_v30  ;;  %1033 = vst.msk [vmem:[%s1684_s12 + $0x5] sm:$0x7] %vm1032_vm3, %v1467_v50  ;;  %s1049_s14 = sshll.u32 %s1684_s12, 4  ;;  %s1035_s8 = scalar_lea.sflag [#allocation4], %s1607_s22  ;;  %s2017_s14 = int_to_ptr.vmem [resolvable:$true] %s1049_s14 }
  0x41   : > { %1204 = vmatprep.subr.mxu0 %v269_v0  ;;  %v941_v28 = vadd.f32 %v1659_v24, %v1655_v21  ;;  %v940_v29 = vadd.f32 %v1661_v25, %v1657_v22  ;;  %vm511_vm4 = vcmp.gt.f32.partialorder %v1655_v21, 0.5  ;;  %vm510_vm5 = vcmp.gt.f32.partialorder %v1657_v22, 0.5  ;;  %s1380_s9 = scalar_lea.vmem %s2017_s14, 128  ;;  %p2088_p11 = scmp.ne.s32.totalorder %s2074_s28, 0 }
  0x42   : > { %1205 = vmatpush3.msra.mxu0 %v269_v0  ;;  %v943_v36 = vadd.f32 %v1669_v32, %v1667_v31  ;;  %v942_v38 = vadd.f32 %v1677_v37, %v1671_v33  ;;  %vm513_vm6 = vcmp.gt.f32.partialorder %v1667_v31, 0.5  ;;  %vm845_vm7 = vcmp.gt.f32.partialorder %v1659_v24, 0.5  ;;  %p1381_p8 = scmp.ne.s32.totalorder %s2017_s14, %s1380_s9  ;;  %s1469_s18 = smov [#allocation5]  }
  0x43   : > { %1207 = vmatmul.mubr.msk.f32.vlgmr.msra.gmra.mrb[0].mxu0 %vm279_vm0, %v265_v2  ;;  %1220 = vmatprep.subr.mxu0 %v1168_v3  ;;  %v1005_v34 = vsel %vm960_vm1, %v941_v28, 0.0  ;;  %v1004_v35 = vsel %vm960_vm1, %v940_v29, 0.0  ;;  %vm844_vm8 = vcmp.gt.f32.partialorder %v1661_v25, 0.5  ;;  %vm847_vm9 = vcmp.gt.f32.partialorder %v1669_v32, 0.5  ;;  %s1384_s27 = sshll.u32 %s1469_s18, 4  ;;  %s1385_s27 = int_to_ptr.vmem [resolvable:$false] %s1384_s27 }
  0x44   : > { %1221 = vmatpush3.msra.mxu0 %v1168_v3  ;;  %1209 = vmatprep.mubr.msk.f32.mxu0 %vm279_vm0, %v266_v4  ;;  %v1006_v39 = vadd.f32 %v1005_v34, %v1004_v35  ;;  %v1009_v40 = vsel %vm960_vm1, %v943_v36, 0.0  ;;  %v1007_v41 = vsel %vm960_vm1, %v942_v38, 0.0  ;;  %v1468_v23 = vmov 0.75   ;;  %p1382_p0 = pnand %p1381_p8, %p2088_p11  ;;  %s1386_s11 = scalar_lea.vmem %s1385_s27, 256 }
  0x45   : > { %v1729_v26 = vsel %vm511_vm4, 0.25, %v1468_v23  ;;  %v1734_v27 = vsel %vm510_vm5, 0.25, %v1468_v23  ;;  %v1740_v29 = vsel %vm513_vm6, 0.25, %v1468_v23  ;;  %v1745_v30 = vsel %vm845_vm7, 0.25, %v1468_v23  ;;  %p1387_p13 = scmp.lt.s32.totalorder %s2017_s14, %s1385_s27  ;;  %p1388_p2 = scmp.lt.s32.totalorder %s1386_s11, %s1380_s9 }
  0x46   : > { %v1008_v42 = vadd.f32 %v1007_v41, %v1006_v39  ;;  %v1751_v35 = vsel %vm844_vm8, 0.25, %v1468_v23  ;;  %v1756_v36 = vsel %vm847_vm9, 0.25, %v1468_v23  ;;  %p1383_p6 = pneg %p1382_p0 }
  0x47   : > { %1210 = vmatmul.mubr.msk.f32.gmra.mrb[2].mxu0 %vm279_vm0, %v267_v5  ;;  %p1389_p5 = por %p1388_p2, %p1387_p13 }
  0x48   : > { %1222 = vmatprep.mubr.msk.f32.mxu0 %vm279_vm0, %v264_v1  ;;  %v1010_v43 = vadd.f32 %v1009_v40, %v1008_v42 }
  0x49   : > { %p1390_p4 = pnand %p1389_p5, %p1383_p6 }
  0x4a   : > { %v1011_v44 = vrot.slane %v1010_v43, 4 }
  0x4b   : > { %1223 = vmatmul.mubr.msk.f32.vlgmr.msra.gmra.mrb[4].mxu0 %vm279_vm0, %v265_v2 }
  0x4c   : > { %1225 = vmatprep.mubr.msk.f32.mxu0 %vm279_vm0, %v266_v4  ;;  %v1012_v45 = vadd.f32 %v1011_v44, %v1010_v43 }
  0x4e   : > { %v1013_v46 = vrot.slane %v1012_v45, 2 }
  0x4f   : > { %1226 = vmatmul.mubr.msk.f32.gmra.mrb[6].mxu0 %vm279_vm0, %v267_v5 }
  0x50   : > { %v1014_v47 = vadd.f32 %v1013_v46, %v1012_v45 }
  0x52   : > { %v1015_v48 = vrot.slane %v1014_v47, 1 }
  0x54   : > { %v1016_v49 = vadd.f32 %v1015_v48, %v1014_v47 }
  0x56   : > { %1017 = vst.msk [vmem:[%s1684_s12 + $0x3] sm:$0x1] %vm974_vm2, %v1016_v49 }
 0x116   : > { %v1208_v7 = vpop.f32.mrb[0].mxu0 }
 0x117   : > { %v358_v8 = vpop.f32.mrb[1].mxu0 }
 0x118   : > { %1214 = vmatprep.mubr.msk.f32.mxu1 %vm279_vm0, %v358_v8 }
 0x119   : > { %1215 = vmatmul.mubr.msk.f32.vlgmr.msra.gmra.mrb[0].mxu1 %vm279_vm0, %v1208_v7 }
 0x11a   : > { %v1211_v9 = vpop.f32.mrb[2].mxu0  ;;  %1229 = vmatpush3.msra.mxu1 %v268_v6 }
 0x11b   : > { %v368_v10 = vpop.f32.mrb[3].mxu0 }
 0x11c   : > { %1217 = vmatprep.mubr.msk.f32.mxu1 %vm279_vm0, %v368_v10 }
 0x11d   : > { %1218 = vmatmul.mubr.msk.f32.gmra.mrb[2].mxu1 %vm279_vm0, %v1211_v9 }
 0x11e   : > { %v1224_v11 = vpop.f32.mrb[4].mxu0 }
 0x11f   : > { %v692_v12 = vpop.f32.mrb[5].mxu0 }
 0x120   : > { %1230 = vmatprep.mubr.msk.f32.mxu1 %vm279_vm0, %v692_v12 }
 0x121   : > { %1231 = vmatmul.mubr.msk.f32.vlgmr.msra.gmra.mrb[4].mxu1 %vm279_vm0, %v1224_v11 }
 0x122   : > { %v1227_v13 = vpop.f32.mrb[6].mxu0 }
 0x123   : > { %v702_v14 = vpop.f32.mrb[7].mxu0 }
 0x124   : > { %1233 = vmatprep.mubr.msk.f32.mxu1 %vm279_vm0, %v702_v14 }
 0x125   : > { %1234 = vmatmul.mubr.msk.f32.gmra.mrb[6].mxu1 %vm279_vm0, %v1227_v13 }
 0x1ec   : > { %v1689_v51 = vpop.f32.mrb[0].mxu1 }
 0x1ed   : > { %v475_v52 = vand.u32 2147483647, %v1689_v51  ;;  %v1692_v53 = vpop.f32.mrb[1].mxu1  ;;  %v515_v16 = vmax.f32 %v1689_v51, 0.0  ;;  %v519_v17 = vmul.f32 %v1689_v51, %v1655_v21  ;;  %vm499_vm10 = vcmp.ge.f32.partialorder %v1689_v51, 0.0 }
 0x1ee   : > { %v474_v54 = vand.u32 2147483647, %v1692_v53  ;;  %v514_v34 = vmax.f32 %v1692_v53, 0.0  ;;  %v518_v40 = vmul.f32 %v1692_v53, %v1657_v22  ;;  %vm498_vm11 = vcmp.ge.f32.partialorder %v1692_v53, 0.0 }
 0x1ef   : > { %v479_v55 = vsub.f32 0.0, %v475_v52  ;;  %v1760_v39 = vsub.f32 %v515_v16, %v519_v17 }
 0x1f0   : > { %v478_v56 = vsub.f32 0.0, %v474_v54  ;;  %v1695_v57 = vpop.f32.mrb[2].mxu1 }
 0x1f1   : > { %v484_v58 = vmul.f32 1.442695, %v479_v55  ;;  %v477_v59 = vand.u32 2147483647, %v1695_v57  ;;  %v1698_v61 = vpop.f32.mrb[3].mxu1  ;;  %v517_v41 = vmax.f32 %v1695_v57, 0.0  ;;  %v521_v43 = vmul.f32 %v1695_v57, %v1667_v31 }
 0x1f2   : > { %v482_v60 = vmul.f32 1.442695, %v478_v56  ;;  %v476_v63 = vand.u32 2147483647, %v1698_v61  ;;  %v1781_v55 = vsub.f32 %v514_v34, %v518_v40  ;;  %vm501_vm14 = vcmp.ge.f32.partialorder %v1695_v57, 0.0 }
 0x1f3   : > { %1302 = vpow2.f32 %v484_v58  ;;  %v481_v62 = vsub.f32 0.0, %v477_v59 }
 0x1f4   : > { %1304 = vpow2.f32 %v482_v60  ;;  %v1701_v0 = vpop.f32.mrb[4].mxu1  ;;  %v480_v3 = vsub.f32 0.0, %v476_v63 }
 0x1f5   : > { %v488_v1 = vmul.f32 1.442695, %v481_v62  ;;  %v809_v2 = vand.u32 2147483647, %v1701_v0  ;;  %v1704_v4 = vpop.f32.mrb[5].mxu1  ;;  %v849_v46 = vmax.f32 %v1701_v0, 0.0  ;;  %v853_v47 = vmul.f32 %v1701_v0, %v1659_v24 }
 0x1f6   : > { %v808_v6 = vand.u32 2147483647, %v1704_v4  ;;  %v486_v12 = vmul.f32 1.442695, %v480_v3  ;;  %v848_v49 = vmax.f32 %v1704_v4, 0.0  ;;  %v852_v50 = vmul.f32 %v1704_v4, %v1661_v25 }
 0x1f7   : > { %1306 = vpow2.f32 %v488_v1  ;;  %v813_v5 = vsub.f32 0.0, %v809_v2  ;;  %v1791_v2 = vsub.f32 %v517_v41, %v521_v43  ;;  %vm833_vm0 = vcmp.ge.f32.partialorder %v1701_v0, 0.0 }
 0x1f8   : > { %v1707_v7 = vpop.f32.mrb[6].mxu1  ;;  %v812_v9 = vsub.f32 0.0, %v808_v6 }
 0x1f9   : > { %v818_v8 = vmul.f32 1.442695, %v813_v5  ;;  %v811_v10 = vand.u32 2147483647, %v1707_v7  ;;  %v1710_v11 = vpop.f32.mrb[7].mxu1  ;;  %v851_v56 = vmax.f32 %v1707_v7, 0.0  ;;  %v855_v60 = vmul.f32 %v1707_v7, %v1669_v32 }
 0x1fa   : > { %v816_v13 = vmul.f32 1.442695, %v812_v9  ;;  %v810_v44 = vand.u32 2147483647, %v1710_v11  ;;  %v1794_v5 = vsub.f32 %v849_v46, %v853_v47 }
 0x1fb   : > { %1308 = vpow2.f32 %v818_v8  ;;  %v815_v14 = vsub.f32 0.0, %v811_v10  ;;  %v1799_v10 = vsub.f32 %v848_v49, %v852_v50 }
 0x1fc   : > { %1310 = vpow2.f32 %v816_v13  ;;  %v814_v62 = vsub.f32 0.0, %v810_v44 }
 0x1fd   : > { %v1718_v15 = vpop.eup %1302  ;;  %v822_v18 = vmul.f32 1.442695, %v815_v14  ;;  %1312 = vpow2.f32 %v486_v12 }
 0x1fe   : > { %v1723_v19 = vpop.eup %1304  ;;  %v491_v20 = vadd.f32 1.0, %v1718_v15  ;;  %v538_v45 = vmul.f32 -0.5, %v1718_v15  ;;  %v541_v54 = vand.u32 2147483647, %v1718_v15  ;;  %v1817_v34 = vmul.f32 1.442695, %v814_v62 }
 0x1ff   : > { %v490_v28 = vadd.f32 1.0, %v1723_v19  ;;  %1314 = vpow2.f32 %v822_v18  ;;  %v529_v48 = vmul.f32 -0.5, %v1723_v19  ;;  %v532_v58 = vand.u32 2147483647, %v1723_v19 }
 0x200   : > { %1316 = vrcp.f32 %v491_v20  ;;  %v539_v1 = vadd.f32 1.0, %v538_v45  ;;  %vm1803_vm12 = vcmp.lt.f32.partialorder %v541_v54, 0.0004427343 }
 0x201   : > { %v1758_v38 = vpop.eup %1306  ;;  %1318 = vlog2.f32 %v491_v20  ;;  %v530_v8 = vadd.f32 1.0, %v529_v48  ;;  %vm1809_vm13 = vcmp.lt.f32.partialorder %v532_v58, 0.0004427343 }
 0x202   : > { %1320 = vrcp.f32 %v490_v28  ;;  %v493_v42 = vadd.f32 1.0, %v1758_v38  ;;  %v556_v3 = vmul.f32 -0.5, %v1758_v38  ;;  %v559_v9 = vand.u32 2147483647, %v1758_v38 }
 0x203   : > { %1322 = vlog2.f32 %v490_v28  ;;  %v1815_v28 = vsub.f32 %v851_v56, %v855_v60  ;;  %v531_v47 = vmul.f32 %v1723_v19, %v530_v8 }
 0x204   : > { %1324 = vrcp.f32 %v493_v42  ;;  %v557_v43 = vadd.f32 1.0, %v556_v3  ;;  %vm1824_vm15 = vcmp.lt.f32.partialorder %v559_v9, 0.0004427343 }
 0x205   : > { %v1778_v52 = vpop.eup %1308  ;;  %1326 = vlog2.f32 %v493_v42  ;;  %v540_v42 = vmul.f32 %v1718_v15, %v539_v1 }
 0x206   : > { %v825_v59 = vadd.f32 1.0, %v1778_v52  ;;  %v1789_v63 = vpop.eup %1310  ;;  %v872_v14 = vmul.f32 -0.5, %v1778_v52  ;;  %v875_v49 = vand.u32 2147483647, %v1778_v52 }
 0x207   : > { %v1796_v6 = vpop.eup %1312  ;;  %v824_v16 = vadd.f32 1.0, %v1789_v63  ;;  %v863_v20 = vmul.f32 -0.5, %v1789_v63 }
 0x208   : > { %1328 = vrcp.f32 %v825_v59  ;;  %v1821_v44 = vadd.f32 1.0, %v1796_v6  ;;  %v873_v56 = vadd.f32 1.0, %v872_v14  ;;  %v558_v14 = vmul.f32 %v1758_v38, %v557_v43 }
 0x209   : > { %v1801_v12 = vpop.eup %1314  ;;  %1330 = vlog2.f32 %v825_v59  ;;  %v864_v19 = vadd.f32 1.0, %v863_v20  ;;  %vm1852_vm3 = vcmp.lt.f32.partialorder %v875_v49, 0.0004427343 }
 0x20a   : > { %v1317_v17 = vpop.eup %1316  ;;  %1332 = vrcp.f32 %v824_v16  ;;  %v827_v60 = vadd.f32 1.0, %v1801_v12  ;;  %v890_v53 = vmul.f32 -0.5, %v1801_v12 }
 0x20b   : > { %v1319_v40 = vpop.eup %1318  ;;  %v503_v41 = vsub.f32 1.0, %v1317_v17  ;;  %1334 = vlog2.f32 %v824_v16  ;;  %v865_v38 = vmul.f32 %v1789_v63, %v864_v19 }
 0x20c   : > { %v1321_v45 = vpop.eup %1320  ;;  %v537_v46 = vmul.f32 0.6931472, %v1319_v40  ;;  %1336 = vlog2.f32 %v1821_v44  ;;  %v891_v49 = vadd.f32 1.0, %v890_v53 }
 0x20d   : > { %v1323_v50 = vpop.eup %1322  ;;  %v1831_v54 = vsel %vm499_vm10, %v1317_v17, %v503_v41  ;;  %v502_v15 = vsub.f32 1.0, %v1321_v45  ;;  %v874_v41 = vmul.f32 %v1778_v52, %v873_v56  ;;  %vm832_vm10 = vcmp.ge.f32.partialorder %v1704_v4, 0.0 }
 0x20e   : > { %v1325_v58 = vpop.eup %1324  ;;  %v543_v59 = vsel %vm1803_vm12, %v540_v42, %v537_v46  ;;  %v528_v3 = vmul.f32 0.6931472, %v1323_v50  ;;  %v567_v9 = vsub.f32 1.0, %v1831_v54  ;;  %1338 = vrcp.f32 %v827_v60 }
 0x20f   : > { %v1327_v62 = vpop.eup %1326  ;;  %v563_v1 = vadd.f32 %v543_v59, %v1760_v39  ;;  %v1840_v51 = vsel %vm498_vm11, %v1321_v45, %v502_v15  ;;  %v505_v8 = vsub.f32 1.0, %v1325_v58  ;;  %v866_v39 = vand.u32 2147483647, %v1789_v63 }
 0x210   : > { %v566_v13 = vsub.f32 1.0, %v1840_v51  ;;  %v534_v16 = vsel %vm1809_vm13, %v531_v47, %v528_v3  ;;  %v555_v17 = vmul.f32 0.6931472, %v1327_v62  ;;  %v571_v52 = vsel %vm511_vm4, %v567_v9, %v1831_v54 }
 0x211   : > { %v562_v40 = vadd.f32 %v534_v16, %v1781_v55  ;;  %v579_v18 = vmul.f32 %v1729_v26, %v563_v1  ;;  %v1860_v45 = vsel %vm501_vm14, %v1325_v58, %v505_v8  ;;  %1340 = vlog2.f32 %v827_v60 }
 0x212   : > { %v1329_v20 = vpop.eup %1328  ;;  %v561_v46 = vsel %vm1824_vm15, %v558_v14, %v555_v17  ;;  %v570_v55 = vsel %vm510_vm5, %v566_v13, %v1840_v51  ;;  %vm1873_vm11 = vcmp.lt.f32.partialorder %v866_v39, 0.0004427343  ;;  %v599_v50 = vmul.f32 %v1831_v54, %v1655_v21 }
 0x213   : > { %v1331_v43 = vpop.eup %1330  ;;  %v578_v26 = vmul.f32 %v1734_v27, %v562_v40  ;;  %v565_v57 = vadd.f32 %v561_v46, %v1791_v2  ;;  %v837_v63 = vsub.f32 1.0, %v1329_v20  ;;  %v611_v15 = vsub.f32 %v1831_v54, %v1655_v21 }
 0x214   : > { %v871_v47 = vmul.f32 0.6931472, %v1331_v43  ;;  %v569_v56 = vsub.f32 1.0, %v1860_v45  ;;  %v893_v27 = vand.u32 2147483647, %v1801_v12  ;;  %v1333_v58 = vpop.eup %1332  ;;  %v583_v59 = vmul.f32 %v579_v18, %v571_v52 }
 0x215   : > { %v582_v2 = vmul.f32 %v578_v26, %v570_v55  ;;  %v598_v19 = vmul.f32 %v1840_v51, %v1657_v22  ;;  %v841_v60 = vsel %vm833_vm0, %v1329_v20, %v837_v63  ;;  %v1335_v62 = vpop.eup %1334  ;;  %v610_v1 = vsub.f32 %v1840_v51, %v1657_v22 }
 0x216   : > { %v601_v21 = vmul.f32 %v1860_v45, %v1667_v31  ;;  %v613_v3 = vsub.f32 %v1860_v45, %v1667_v31  ;;  %v877_v8 = vsel %vm1852_vm3, %v874_v41, %v871_v47  ;;  %v581_v9 = vmul.f32 %v1740_v29, %v565_v57  ;;  %v1899_v16 = vpop.eup %1336 }
 0x217   : > { %v897_v13 = vadd.f32 %v877_v8, %v1794_v5  ;;  %v901_v14 = vsub.f32 1.0, %v841_v60  ;;  %v929_v0 = vadd.f32 %v841_v60, %v1831_v54  ;;  %vm835_vm4 = vcmp.ge.f32.partialorder %v1707_v7, 0.0 }
 0x218   : > { %v1904_v22 = vsel %vm513_vm6, %v569_v56, %v1860_v45  ;;  %v933_v17 = vmul.f32 %v841_v60, %v1659_v24  ;;  %v945_v39 = vsub.f32 %v841_v60, %v1659_v24  ;;  %v836_v53 = vsub.f32 1.0, %v1333_v58  ;;  %v1339_v43 = vpop.eup %1338 }
 0x219   : > { %v587_v29 = vmul.f32 %v583_v59, %v571_v52  ;;  %v586_v20 = vmul.f32 %v582_v2, %v570_v55  ;;  %v905_v5 = vsel %vm845_vm7, %v901_v14, %v841_v60  ;;  %v913_v54 = vmul.f32 %v1745_v30, %v897_v13 }
 0x21a   : > { %v937_v40 = vadd.f32 %v933_v17, %v599_v50  ;;  %v949_v41 = vsub.f32 %v945_v39, %v611_v15  ;;  %v840_v42 = vsel %vm832_vm10, %v1333_v58, %v836_v53  ;;  %v862_v31 = vmul.f32 0.6931472, %v1335_v62 }
 0x21b   : > { %v585_v18 = vmul.f32 %v581_v9, %v1904_v22  ;;  %v917_v46 = vmul.f32 %v913_v54, %v905_v5  ;;  %v900_v26 = vsub.f32 1.0, %v840_v42  ;;  %v928_v57 = vadd.f32 %v840_v42, %v1840_v51  ;;  %v1341_v52 = vpop.eup %1340 }
 0x21c   : > { %v953_v55 = vand.u32 2147483647, %v949_v41  ;;  %v977_v24 = vsel %vm960_vm1, %v929_v0, 0.0  ;;  %v868_v30 = vsel %vm1873_vm11, %v865_v38, %v862_v31  ;;  %v932_v63 = vmul.f32 %v840_v42, %v1661_v25 }
 0x21d   : > { %v921_v47 = vmul.f32 %v917_v46, %v905_v5  ;;  %v991_v4 = vsel %vm960_vm1, %v937_v40, 0.0  ;;  %v896_v50 = vadd.f32 %v868_v30, %v1799_v10  ;;  %v944_v15 = vsub.f32 %v840_v42, %v1661_v25 }
 0x21e   : > { %v1019_v56 = vsel %vm960_vm1, %v953_v55, 0.0  ;;  %v904_v51 = vsel %vm844_vm8, %v900_v26, %v840_v42  ;;  %v936_v58 = vadd.f32 %v932_v63, %v598_v19  ;;  %v839_v59 = vsub.f32 1.0, %v1339_v43 }
 0x21f   : > { %v925_v2 = vadd.f32 %v921_v47, %v587_v29  ;;  %v912_v48 = vmul.f32 %v1751_v35, %v896_v50  ;;  %v948_v38 = vsub.f32 %v944_v15, %v610_v1  ;;  %v889_v60 = vmul.f32 0.6931472, %v1341_v52 }
 0x220   : > { %v976_v62 = vsel %vm960_vm1, %v928_v57, 0.0  ;;  %v990_v8 = vsel %vm960_vm1, %v936_v58, 0.0  ;;  %v843_v10 = vsel %vm835_vm4, %v1339_v43, %v839_v59  ;;  %v892_v9 = vmul.f32 %v1801_v12, %v891_v49 }
 0x221   : > { %v916_v13 = vmul.f32 %v912_v48, %v904_v51  ;;  %v952_v14 = vand.u32 2147483647, %v948_v38  ;;  %vm894_vm5 = vcmp.lt.f32.partialorder %v893_v27, 0.0004427343  ;;  %v903_v25 = vsub.f32 1.0, %v843_v10 }
 0x222   : > { %v895_v19 = vsel %vm894_vm5, %v892_v9, %v889_v60  ;;  %v1932_v0 = vadd.f32 %v843_v10, %v1860_v45  ;;  %v935_v35 = vmul.f32 %v843_v10, %v1669_v32  ;;  %v947_v1 = vsub.f32 %v843_v10, %v1669_v32 }
 0x223   : > { %v962_v17 = vsel %vm960_vm1, %v925_v2, 0.0  ;;  %v920_v39 = vmul.f32 %v916_v13, %v904_v51  ;;  %v1018_v7 = vsel %vm960_vm1, %v952_v14, 0.0  ;;  %v899_v53 = vadd.f32 %v895_v19, %v1815_v28 }
 0x224   : > { %v907_v12 = vsel %vm847_vm9, %v903_v25, %v843_v10  ;;  %v1941_v49 = vadd.f32 %v935_v35, %v601_v21  ;;  %v1943_v27 = vsub.f32 %v947_v1, %v613_v3  ;;  %1342 = vpow2.f32 %v1817_v34 }
 0x225   : > { %v924_v45 = vadd.f32 %v920_v39, %v586_v20  ;;  %v915_v29 = vmul.f32 %v1756_v36, %v899_v53  ;;  %v1947_v5 = vadd.f32 %v977_v24, %v976_v62  ;;  %v1949_v54 = vadd.f32 %v991_v4, %v990_v8 }
 0x226   : > { %1344 = vrcp.f32 %v1821_v44  ;;  %v1952_v40 = vadd.f32 %v1019_v56, %v1018_v7  ;;  %v589_v3 = vmul.f32 %v585_v18, %v1904_v22  ;;  %v547_v36 = vmul.f32 -0.5, %v1796_v6 }
 0x227   : > { %v961_v32 = vsel %vm960_vm1, %v924_v45, 0.0  ;;  %v919_v28 = vmul.f32 %v915_v29, %v907_v12  ;;  %v550_v44 = vand.u32 2147483647, %v1796_v6  ;;  %v546_v46 = vmul.f32 0.6931472, %v1899_v16 }
 0x228   : > { %v1955_v21 = vadd.f32 %v962_v17, %v961_v32  ;;  %v548_v43 = vadd.f32 1.0, %v547_v36  ;;  %v516_v57 = vmax.f32 %v1698_v61, 0.0  ;;  %v520_v22 = vmul.f32 %v1698_v61, %v1671_v33 }
 0x229   : > { %v923_v41 = vmul.f32 %v919_v28, %v907_v12  ;;  %vm551_vm6 = vcmp.lt.f32.partialorder %v550_v44, 0.0004427343  ;;  %vm500_vm7 = vcmp.ge.f32.partialorder %v1698_v61, 0.0  ;;  %vm512_vm8 = vcmp.gt.f32.partialorder %v1671_v33, 0.5 }
 0x22a   : > { %v549_v18 = vmul.f32 %v1796_v6, %v548_v43  ;;  %v524_v30 = vsub.f32 %v516_v57, %v520_v22  ;;  %vm846_vm9 = vcmp.gt.f32.partialorder %v1677_v37, 0.5  ;;  %v850_v63 = vmax.f32 %v1710_v11, 0.0 }
 0x22b   : > { %v1958_v34 = vadd.f32 %v923_v41, %v589_v3  ;;  %v854_v47 = vmul.f32 %v1710_v11, %v1677_v37  ;;  %v576_v6 = vsel %vm512_vm8, 0.25, %v1468_v23  ;;  %vm834_vm12 = vcmp.ge.f32.partialorder %v1710_v11, 0.0 }
 0x22c   : > { %v552_v55 = vsel %vm551_vm6, %v549_v18, %v546_v46  ;;  %v910_v58 = vsel %vm846_vm9, 0.25, %v1468_v23  ;;  %v955_v12 = vand.u32 2147483647, %v1943_v27  ;;  %v981_v45 = vsel %vm960_vm1, %v1932_v0, 0.0 }
 0x22d   : > { %v564_v16 = vadd.f32 %v552_v55, %v524_v30  ;;  %v858_v2 = vsub.f32 %v850_v63, %v854_v47  ;;  %v995_v41 = vsel %vm960_vm1, %v1941_v49, 0.0  ;;  %v966_v18 = vsel %vm960_vm1, %v1958_v34, 0.0 }
 0x22e   : > { %v1343_v20 = vpop.eup %1342  ;;  %v1023_v0 = vsel %vm960_vm1, %v955_v12, 0.0 }
 0x22f   : > { %v826_v42 = vadd.f32 1.0, %v1343_v20  ;;  %v881_v52 = vmul.f32 -0.5, %v1343_v20  ;;  %v884_v61 = vand.u32 2147483647, %v1343_v20  ;;  %v580_v59 = vmul.f32 %v576_v6, %v564_v16 }
 0x230   : > { %v1345_v31 = vpop.eup %1344 }
 0x231   : > { %1346 = vrcp.f32 %v826_v42  ;;  %v504_v26 = vsub.f32 1.0, %v1345_v31  ;;  %v882_v4 = vadd.f32 1.0, %v881_v52  ;;  %vm885_vm13 = vcmp.lt.f32.partialorder %v884_v61, 0.0004427343 }
 0x232   : > { %1348 = vlog2.f32 %v826_v42 }
 0x233   : > { %v508_v24 = vsel %vm500_vm7, %v1345_v31, %v504_v26  ;;  %v883_v38 = vmul.f32 %v1343_v20, %v882_v4 }
 0x234   : > { %v568_v50 = vsub.f32 1.0, %v508_v24  ;;  %v600_v62 = vmul.f32 %v508_v24, %v1671_v33  ;;  %v612_v14 = vsub.f32 %v508_v24, %v1671_v33 }
 0x236   : > { %v572_v60 = vsel %vm512_vm8, %v568_v50, %v508_v24 }
 0x237   : > { %v584_v19 = vmul.f32 %v580_v59, %v572_v60 }
 0x239   : > { %v588_v3 = vmul.f32 %v584_v19, %v572_v60 }
 0x23b   : > { %v1347_v15 = vpop.eup %1346 }
 0x23c   : > { %v1349_v56 = vpop.eup %1348  ;;  %v838_v51 = vsub.f32 1.0, %v1347_v15 }
 0x23d   : > { %v880_v48 = vmul.f32 0.6931472, %v1349_v56 }
 0x23e   : > { %v842_v8 = vsel %vm834_vm12, %v1347_v15, %v838_v51 }
 0x23f   : > { %v886_v10 = vsel %vm885_vm13, %v883_v38, %v880_v48  ;;  %v902_v9 = vsub.f32 1.0, %v842_v8  ;;  %v930_v13 = vadd.f32 %v842_v8, %v508_v24  ;;  %v934_v11 = vmul.f32 %v842_v8, %v1677_v37 }
 0x240   : > { %v898_v25 = vadd.f32 %v886_v10, %v858_v2  ;;  %v946_v23 = vsub.f32 %v842_v8, %v1677_v37 }
 0x241   : > { %v906_v35 = vsel %vm846_vm9, %v902_v9, %v842_v8  ;;  %v938_v1 = vadd.f32 %v934_v11, %v600_v62  ;;  %v979_v17 = vsel %vm960_vm1, %v930_v13, 0.0 }
 0x242   : > { %v914_v39 = vmul.f32 %v910_v58, %v898_v25  ;;  %v950_v7 = vsub.f32 %v946_v23, %v612_v14  ;;  %v980_v53 = vadd.f32 %v979_v17, %v1947_v5 }
 0x243   : > { %v993_v33 = vsel %vm960_vm1, %v938_v1, 0.0 }
 0x244   : > { %v918_v29 = vmul.f32 %v914_v39, %v906_v35  ;;  %v954_v32 = vand.u32 2147483647, %v950_v7  ;;  %v982_v28 = vadd.f32 %v981_v45, %v980_v53  ;;  %v994_v37 = vadd.f32 %v993_v33, %v1949_v54 }
 0x246   : > { %v922_v36 = vmul.f32 %v918_v29, %v906_v35  ;;  %v983_v20 = vrot.slane %v982_v28, 4  ;;  %v996_v42 = vadd.f32 %v995_v41, %v994_v37  ;;  %v1021_v5 = vsel %vm960_vm1, %v954_v32, 0.0 }
 0x247   : > { %v1022_v27 = vadd.f32 %v1021_v5, %v1952_v40 }
 0x248   : > { %v926_v31 = vadd.f32 %v922_v36, %v588_v3  ;;  %v984_v43 = vadd.f32 %v983_v20, %v982_v28  ;;  %v997_v44 = vrot.slane %v996_v42, 4 }
 0x249   : > { %v1024_v46 = vadd.f32 %v1023_v0, %v1022_v27 }
 0x24a   : > { %v964_v26 = vsel %vm960_vm1, %v926_v31, 0.0  ;;  %v985_v54 = vrot.slane %v984_v43, 2  ;;  %v998_v57 = vadd.f32 %v997_v44, %v996_v42 }
 0x24b   : > { %v965_v22 = vadd.f32 %v964_v26, %v1955_v21  ;;  %v1025_v49 = vrot.slane %v1024_v46, 4 }
 0x24c   : > { %v986_v52 = vadd.f32 %v985_v54, %v984_v43  ;;  %v999_v40 = vrot.slane %v998_v57, 2 }
 0x24d   : > { %v967_v55 = vadd.f32 %v966_v18, %v965_v22  ;;  %v1026_v24 = vadd.f32 %v1025_v49, %v1024_v46 }
 0x24e   : > { %v987_v30 = vrot.slane %v986_v52, 1  ;;  %v1000_v16 = vadd.f32 %v999_v40, %v998_v57 }
 0x24f   : > { %v968_v63 = vrot.slane %v967_v55, 4  ;;  %v1027_v47 = vrot.slane %v1026_v24, 2 }
 0x250   : > { %v988_v4 = vadd.f32 %v987_v30, %v986_v52  ;;  %v1001_v50 = vrot.slane %v1000_v16, 1 }
 0x251   : > { %v969_v21 = vadd.f32 %v968_v63, %v967_v55  ;;  %v1028_v6 = vadd.f32 %v1027_v47, %v1026_v24 }
 0x252   : > { %v1002_v61 = vadd.f32 %v1001_v50, %v1000_v16  ;;  %989 = vst.msk [vmem:[%s1684_s12 + $0x1] sm:$0x1] %vm974_vm2, %v988_v4 }
 0x253   : > { %v970_v34 = vrot.slane %v969_v21, 2  ;;  %v1029_v15 = vrot.slane %v1028_v6, 1 }
 0x254   : > { %1003 = vst.msk [vmem:[%s1684_s12 + $0x2] sm:$0x1] %vm974_vm2, %v1002_v61 }
 0x255   : > { %v971_v56 = vadd.f32 %v970_v34, %v969_v21  ;;  %v1030_v51 = vadd.f32 %v1029_v15, %v1028_v6 }
 0x257   : > { %v972_v58 = vrot.slane %v971_v56, 1  ;;  %1031 = vst.msk [vmem:[%s1684_s12 + $0x4] sm:$0x1] %vm974_vm2, %v1030_v51 }
 0x259   : > { %v973_v59 = vadd.f32 %v972_v58, %v971_v56 }
 0x25b   : > { %975 = vst.msk [vmem:[%s1684_s12] sm:$0x1] %vm974_vm2, %v973_v59 }
 0x25c   : > { %1393 = shalt.err (!%p1390_p4)
}
 0x25d   : > { %s1394_s22 = scalar_lea.hbm %s2015_s7, 128  ;;  %s1398_s25 = scalar_lea.hbm %s2070_s4, 256 }
 0x25e   : > { %p1395_p7 = scmp.ne.s32.totalorder %s2015_s7, %s1394_s22  ;;  %p1399_p1 = scmp.lt.u32.totalorder %s2015_s7, %s2070_s4 }
 0x25f   : > { %p1400_p3 = scmp.lt.u32.totalorder %s1398_s25, %s1394_s22  ;;  %p1402_p8 = scmp.lt.u32.totalorder %s1394_s22, %s2015_s7 }
 0x260   : > { %p1396_p10 = pnand %p1395_p7, %p2088_p11 }
 0x261   : > { %p1401_p9 = por %p1400_p3, %p1399_p1 }
 0x262   : > { %p1397_p12 = pneg %p1396_p10 }
 0x263   : > { %p1403_p0 = por %p1402_p8, %p1401_p9 }
 0x265   : > { %p1404_p6 = pnand %p1403_p0, %p1397_p12 }
 0x267   : > { %1407 = shalt.err (!%p1404_p6)
}
 0x268   : > { %1238 = dma.vmem_to_hbm [thread:$0]  (%p2088_p11), %s2017_s14, 128, %s2015_s7, %s1035_s8  }
 0x269 PF: > { %s1061_s12 = sand.u32 1, %s1442_s15   ;;  %p2089_p13 = scmp.ne.s32.totalorder %s2075_s30, 0 }
 0x26a   : > { %p2090_p2 = scmp.ge.s32.totalorder %s1462_s20, 2  ;;  %s1062_s13 = scalar_lea.sflag [#allocation4], %s1061_s12 }
 0x26c   : > { %p1245_p5 = pnand %p2090_p2, %p2089_p13 }
 0x26e   : > { %1437 = dma.done.wait (!%p1245_p5), %s1062_s13, 128  }
 0x26f   : > { %1439 = vsyncadd (!%p1245_p5), %s1062_s13, 4294967168  ;;  %s20_s20 = sadd.s32 1, %s1462_s20   ;;  %s2091_s15 = smov %s1446_s16 }
 0x270   : > { %p17_p4 = scmp.ge.s32.totalorder %s20_s20, 4   ;;  %s2092_s16 = smov %s1450_s17 }
 0x271   : > { %s2093_s17 = smov %s1551_s29  ;;  %s2094_s18 = smov %s1458_s19 }
 0x272   : > { %s2095_s19 = smov %s2097_s23  ;;  %19 = sbr.rel (!%p17_p4) target bundleno = 6 (0x6), region = 86 }
 0x279   :  { %1067 = vsyncpa [#allocation3], 1 }
 0x27a   :  { %1069 = vsyncpa [#allocation3 + $0x1], 1 }
 0x27b   :  { %1070 = vsyncpa [#allocation4], 1 }
 0x27c   :  { %1072 = vsyncpa [#allocation4 + $0x1], 1 }

</bundles_post_ra>
